<compile_context>
chip_gen: v7x
topology: tpu7x:2x2x1
jax: 0.10.0
libtpu: 0.0.40
codegen_flags: <defaults>
</compile_context>

<pallas_src>
import functools

import jax
import jax.numpy as jnp
from jax.experimental import pallas as pl
from jax.experimental.pallas import tpu as pltpu


# ----------------------------------------------------------------------------
# Pallas kernel: fused LayerNorm(d1) -> Linear(d1, d2) -> LayerNorm(d2) over a
# (tm, dp1) -> (tm, dp2) row tile.  dp1/dp2 are lane-padded sizes; d1/d2 are
# the true feature counts.  Padded lanes of x / gamma / beta / weight / bias
# are zero (guaranteed by the wrapper), so statistics are corrected
# analytically rather than masked.
# ----------------------------------------------------------------------------
def _patch_embed_kernel(x_ref, w_ref, b_ref, g1_ref, b1_ref, g2_ref, b2_ref,
                        o_ref, *, d1, d2, eps):
    dp1 = x_ref.shape[-1]
    dp2 = o_ref.shape[-1]
    pad1 = dp1 - d1
    pad2 = dp2 - d2

    x = x_ref[...].astype(jnp.float32)                    # (TM, dp1); pads are 0

    # --- LayerNorm over the real patch_dim (f32 statistics) ----------------
    inv_d1 = 1.0 / d1
    mu1 = jnp.sum(x, axis=-1, keepdims=True) * inv_d1      # padded lanes add 0
    xc = x - mu1
    ssq1 = jnp.sum(xc * xc, axis=-1, keepdims=True)
    if pad1:                                               # each padded lane adds mu1^2
        ssq1 = ssq1 - float(pad1) * (mu1 * mu1)
    xn = xc * jax.lax.rsqrt(ssq1 * inv_d1 + eps)
    xn = xn * g1_ref[...] + b1_ref[...]                    # padded lanes -> exactly 0

    # --- Linear: MXU matmul, f32 accumulation ------------------------------
    y = jnp.dot(xn.astype(w_ref.dtype), w_ref[...],
                preferred_element_type=jnp.float32)         # (TM, dp2); pads are 0
    y = y + b_ref[...]

    # --- LayerNorm over the real dim ----------------------------------------
    inv_d2 = 1.0 / d2
    mu2 = jnp.sum(y, axis=-1, keepdims=True) * inv_d2
    yc = y - mu2
    ssq2 = jnp.sum(yc * yc, axis=-1, keepdims=True)
    if pad2:
        ssq2 = ssq2 - float(pad2) * (mu2 * mu2)
    yn = yc * jax.lax.rsqrt(ssq2 * inv_d2 + eps)
    o_ref[...] = (yn * g2_ref[...] + b2_ref[...]).astype(o_ref.dtype)


def _round_up(x, m):
    return ((x + m - 1) // m) * m


def _vmem_capacity_bytes():
    """Physical VMEM of the current generation (fallback: v7x's 64 MiB)."""
    try:
        return int(pltpu.get_tpu_info().vmem_capacity_bytes)
    except Exception:  # query unavailable: assume the smallest (v7x) and be safe
        return 64 * 1024 * 1024


def _choose_tm(n, dp1, dp2, in_itemsize, w_itemsize, vmem_budget):
    """Row tile: MXU aligned, VMEM-aware (incl. the f32 intermediates the
    compiler materializes), and small enough for >= ~8 grid steps."""
    # Live VMEM per tile row: double-buffered in/out blocks plus the f32
    # intermediates (x, xc/xn, bf16 cast, y, yc/yn ~= 3*dp1 + 3*dp2 words).
    per_row = (2 * dp1 * in_itemsize + 2 * dp2 * 4
               + (3 * dp1 + 3 * dp2) * 4)
    # Grid-invariant blocks (weight + params), conservatively double-buffered.
    fixed = 2 * dp1 * dp2 * w_itemsize + 2 * 4 * (2 * dp1 + 3 * dp2) + (2 << 20)
    avail = max(vmem_budget - fixed, 1 << 20)
    tm = avail // per_row
    tm = min(tm, 512)                        # bound intermediate live range
    if n >= 8 * 256:                         # >= 8 grid steps (>= 4 per v7x core)
        tm = min(tm, max(256, (n // 8) // 256 * 256))
    if tm >= 256:
        tm = (tm // 256) * 256               # MXU-aligned (2x256^2 on v6e/v7x)
    elif tm >= 128:
        tm = 128
    else:
        tm = max(8, (tm // 8) * 8)           # sublane multiple
    return max(8, min(tm, _round_up(n, 8)))


def _fused_norm_linear_norm(x2d, w_p, b_p, g1_p, b1_p, g2_p, b2_p, *,
                            d1, d2, eps, out_dtype):
    """x2d: (N, dp1) lane-padded -> (N, dp2) lane-padded, dtype out_dtype."""
    n, dp1 = x2d.shape
    dp2 = w_p.shape[1]
    in_itemsize = jnp.dtype(x2d.dtype).itemsize
    w_itemsize = jnp.dtype(w_p.dtype).itemsize

    vmem_cap = _vmem_capacity_bytes()
    # ~45% of physical VMEM for this call: ~28 MiB on v7x, ~57 MiB on v5e/v6e.
    tm = _choose_tm(n, dp1, dp2, in_itemsize, w_itemsize,
                    vmem_budget=int(vmem_cap * 0.45))
    grid_m = pl.cdiv(n, tm)
    # NOTE: when n % tm != 0 the tail block reads Pallas-padded rows; LN is
    # strictly per-row and the excess output rows are masked on store, so the
    # garbage never escapes.

    kernel = functools.partial(_patch_embed_kernel, d1=d1, d2=d2, eps=eps)
    full = lambda i: (0, 0)

    # Advisory cost estimate so XLA schedules neighbours around the call.
    flops = 2 * n * dp1 * dp2
    bytes_accessed = (n * dp1 * in_itemsize + n * dp2 * jnp.dtype(out_dtype).itemsize
                      + dp1 * dp2 * w_itemsize + 4 * (2 * dp1 + 3 * dp2))

    vmem_need = (2 * tm * dp1 * in_itemsize + 2 * tm * dp2 * 4   # in/out blocks
                 + 2 * dp1 * dp2 * w_itemsize                    # weight (2 bufs)
                 + 2 * 4 * (2 * dp1 + 3 * dp2)                   # params (2 bufs)
                 + tm * (3 * dp1 + 3 * dp2) * 4                  # f32 intermediates
                 + (4 << 20))                                    # margin
    vmem_limit = int(min(max(vmem_need, 32 << 20), int(vmem_cap * 0.85)))

    return pl.pallas_call(
        kernel,
        out_shape=jax.ShapeDtypeStruct((n, dp2), out_dtype),
        grid_spec=pltpu.PrefetchScalarGridSpec(
            num_scalar_prefetch=0,
            grid=(grid_m,),
            in_specs=[
                pl.BlockSpec((tm, dp1), lambda i: (i, 0)),   # x tile
                pl.BlockSpec((dp1, dp2), full),              # linear weight
                pl.BlockSpec((1, dp2), full),                # linear bias
                pl.BlockSpec((1, dp1), full),                # norm1 gamma
                pl.BlockSpec((1, dp1), full),                # norm1 beta
                pl.BlockSpec((1, dp2), full),                # norm2 gamma
                pl.BlockSpec((1, dp2), full),                # norm2 beta
            ],
            out_specs=pl.BlockSpec((tm, dp2), lambda i: (i, 0)),
        ),
        compiler_params=pltpu.CompilerParams(
            dimension_semantics=("parallel",),
            vmem_limit_bytes=vmem_limit,
            # Let XLA fuse the rearrange/pad/cast producer of x2d straight into
            # the kernel's input pipeline (no standalone HBM rearrange pass).
            allow_input_fusion=[True, False, False, False, False, False, False],
        ),
        cost_estimate=pl.CostEstimate(
            flops=flops, transcendentals=2 * n, bytes_accessed=bytes_accessed),
    )(x2d, w_p, b_p, g1_p, b1_p, g2_p, b2_p)


# ----------------------------------------------------------------------------
# Module-level wrapper (rearrange glue fused into the call + Pallas hot path)
# ----------------------------------------------------------------------------
@functools.partial(jax.jit, static_argnames=(
    "patch_height", "patch_width", "frame_patch_size", "eps", "compute_dtype"))
def patch_embedding_forward(x, params, *, patch_height, patch_width,
                            frame_patch_size, eps=1e-5,
                            compute_dtype=jnp.bfloat16):
    """x: (b, c, F, H, W) with F=f*pf, H=h*p1, W=w*p2.  Returns (b, f, h*w, dim).

    compute_dtype: MXU-operand dtype for activations + weight.  bf16 (default)
    halves HBM traffic; LayerNorm statistics are always f32.  Pass jnp.float32
    for strict PyTorch parity at reduced MXU rate."""
    b, c, F, H, W = x.shape
    p1, p2, pf = patch_height, patch_width, frame_patch_size
    f, h, w = F // pf, H // p1, W // p2
    patch_dim = p1 * p2 * pf * c
    dim = params["w"].shape[1]

    # einops: 'b c (f pf) (h p1) (w p2) -> b f (h w) (p1 p2 pf c)'.
    # With allow_input_fusion this whole producer fuses into the pallas_call
    # input DMA instead of a separate HBM round trip.
    xr = x.reshape(b, c, f, pf, h, p1, w, p2)
    xr = jnp.transpose(xr, (0, 2, 4, 6, 5, 7, 3, 1))          # b f h w p1 p2 pf c
    n = b * f * h * w
    x2d = xr.reshape(n, patch_dim)

    # Lane-dense padding to multiples of 128 (no-op for realistic ViViT dims).
    # jnp.pad zero-fills, which the in-kernel variance correction and the
    # zero-padded params/weight rely on.
    dp1 = _round_up(patch_dim, 128)
    dp2 = _round_up(dim, 128)
    if dp1 != patch_dim:
        x2d = jnp.pad(x2d, ((0, 0), (0, dp1 - patch_dim)))
    x2d = x2d.astype(compute_dtype)

    w_p = params["w"]
    if dp1 != patch_dim or dp2 != dim:
        w_p = jnp.pad(w_p, ((0, dp1 - patch_dim), (0, dp2 - dim)))
    w_p = w_p.astype(compute_dtype)

    def pad_vec(v, dpad):
        d = v.shape[-1]
        return jnp.pad(v, ((0, 0), (0, dpad - d))) if dpad != d else v

    b_p = pad_vec(params["b"], dp2).astype(jnp.float32)
    g1_p = pad_vec(params["g1"], dp1).astype(jnp.float32)
    b1_p = pad_vec(params["b1"], dp1).astype(jnp.float32)
    g2_p = pad_vec(params["g2"], dp2).astype(jnp.float32)
    b2_p = pad_vec(params["b2"], dp2).astype(jnp.float32)

    out2d = _fused_norm_linear_norm(
        x2d, w_p, b_p, g1_p, b1_p, g2_p, b2_p,
        d1=patch_dim, d2=dim, eps=eps, out_dtype=x.dtype)

    if dp2 != dim:
        out2d = out2d[:, :dim]
    return out2d.reshape(b, f, h * w, dim)


# ----------------------------------------------------------------------------
# Pure-JAX reference (f32 end to end)
# ----------------------------------------------------------------------------
def _reference_forward(x, params, *, patch_height, patch_width,
                       frame_patch_size, eps=1e-5):
    b, c, F, H, W = x.shape
    p1, p2, pf = patch_height, patch_width, frame_patch_size
    f, h, w = F // pf, H // p1, W // p2
    xr = x.reshape(b, c, f, pf, h, p1, w, p2)
    xr = jnp.transpose(xr, (0, 2, 4, 6, 5, 7, 3, 1)).reshape(
        b, f, h * w, p1 * p2 * pf * c)

    def ln(v, g, bta):
        mu = jnp.mean(v, axis=-1, keepdims=True)
        var = jnp.mean((v - mu) ** 2, axis=-1, keepdims=True)
        return (v - mu) * jax.lax.rsqrt(var + eps) * g + bta

    y = ln(xr, params["g1"][0], params["b1"][0])
    y = y @ params["w"] + params["b"][0]
    y = ln(y, params["g2"][0], params["b2"][0])
    return y


if __name__ == "__main__":
    # Small shapes consistent with the module.
    patch_height, patch_width, frame_patch_size = 2, 2, 2
    b, c = 2, 4
    F, H, W = 4, 16, 16                       # f=2, h=8, w=8 -> n = 256 rows
    patch_dim = patch_height * patch_width * frame_patch_size * c   # 32
    dim = 32

    key = jax.random.PRNGKey(0)
    kx, kw, kb = jax.random.split(key, 3)

    x = jax.random.normal(kx, (b, c, F, H, W), dtype=jnp.float32)

    # PyTorch-style defaults: LayerNorm gamma=1, beta=0; Linear uniform init.
    bound = 1.0 / (patch_dim ** 0.5)
    params = {
        "w": jax.random.uniform(kw, (patch_dim, dim), jnp.float32,
                                -bound, bound),
        "b": jax.random.uniform(kb, (1, dim), jnp.float32, -bound, bound),
        "g1": jnp.ones((1, patch_dim), jnp.float32),
        "b1": jnp.zeros((1, patch_dim), jnp.float32),
        "g2": jnp.ones((1, dim), jnp.float32),
        "b2": jnp.zeros((1, dim), jnp.float32),
    }

    out = patch_embedding_forward(
        x, params,
        patch_height=patch_height,
        patch_width=patch_width,
        frame_patch_size=frame_patch_size,
    )
    out = jax.block_until_ready(out)

    ref = _reference_forward(
        x, params,
        patch_height=patch_height,
        patch_width=patch_width,
        frame_patch_size=frame_patch_size,
    )
    assert out.shape == (b, F // frame_patch_size,
                         (H // patch_height) * (W // patch_width), dim)
    # bf16 MXU operands / bf16 activation feed (documented precision contract)
    # => slightly looser tolerance than pure-f32.
    err = float(jnp.max(jnp.abs(out - ref)))
    assert jnp.allclose(out, ref, atol=5e-2, rtol=5e-2), err

    print("KERNEL_OK")
</pallas_src>

<mosaic_0001>
module attributes {stable_mosaic.version = 11 : i64} {
  func.func @_patch_embed_kernel(%arg0: i32, %arg1: memref<256x128xbf16, #tpu.memory_space<vmem>>, %arg2: memref<128x128xbf16, #tpu.memory_space<vmem>>, %arg3: memref<1x128xf32, #tpu.memory_space<vmem>>, %arg4: memref<1x128xf32, #tpu.memory_space<vmem>>, %arg5: memref<1x128xf32, #tpu.memory_space<vmem>>, %arg6: memref<1x128xf32, #tpu.memory_space<vmem>>, %arg7: memref<1x128xf32, #tpu.memory_space<vmem>>, %arg8: memref<256x128xf32, #tpu.memory_space<vmem>>) attributes {dimension_semantics = [#tpu.dimension_semantics<parallel>], iteration_bounds = array<i64: 1>, scalar_prefetch = 0 : i64, scratch_operands = 0 : i64, tpu.core_type = #tpu.core_type<tc>, window_params = [{transform_indices = @transform_0, window_bounds = array<i64: 256, 128>}, {pipeline_mode = #tpu.pipeline_mode<synchronous>, transform_indices = @transform_1, window_bounds = array<i64: 128, 128>}, {pipeline_mode = #tpu.pipeline_mode<synchronous>, transform_indices = @transform_2, window_bounds = array<i64: 1, 128>}, {pipeline_mode = #tpu.pipeline_mode<synchronous>, transform_indices = @transform_3, window_bounds = array<i64: 1, 128>}, {pipeline_mode = #tpu.pipeline_mode<synchronous>, transform_indices = @transform_4, window_bounds = array<i64: 1, 128>}, {pipeline_mode = #tpu.pipeline_mode<synchronous>, transform_indices = @transform_5, window_bounds = array<i64: 1, 128>}, {pipeline_mode = #tpu.pipeline_mode<synchronous>, transform_indices = @transform_6, window_bounds = array<i64: 1, 128>}, {transform_indices = @transform_7, window_bounds = array<i64: 256, 128>}]} {
    %c0 = arith.constant 0 : index
    %c0_0 = arith.constant 0 : index
    %0 = vector.load %arg1[%c0, %c0_0] : memref<256x128xbf16, #tpu.memory_space<vmem>>, vector<256x128xbf16>
    %1 = arith.extf %0 : vector<256x128xbf16> to vector<256x128xf32>
    %cst = arith.constant dense<0.000000e+00> : vector<256xf32>
    %2 = vector.multi_reduction <add>, %1, %cst [1] : vector<256x128xf32> to vector<256xf32>
    %3 = vector.shape_cast %2 : vector<256xf32> to vector<256x1xf32>
    %cst_1 = arith.constant 3.125000e-02 : f32
    %4 = vector.broadcast %cst_1 : f32 to vector<256x1xf32>
    %5 = arith.mulf %3, %4 : vector<256x1xf32>
    %6 = vector.broadcast %5 : vector<256x1xf32> to vector<256x128xf32>
    %7 = arith.subf %1, %6 : vector<256x128xf32>
    %8 = arith.mulf %7, %7 : vector<256x128xf32>
    %cst_2 = arith.constant dense<0.000000e+00> : vector<256xf32>
    %9 = vector.multi_reduction <add>, %8, %cst_2 [1] : vector<256x128xf32> to vector<256xf32>
    %10 = vector.shape_cast %9 : vector<256xf32> to vector<256x1xf32>
    %11 = arith.mulf %5, %5 : vector<256x1xf32>
    %cst_3 = arith.constant 9.600000e+01 : f32
    %12 = vector.broadcast %cst_3 : f32 to vector<256x1xf32>
    %13 = arith.mulf %12, %11 : vector<256x1xf32>
    %14 = arith.subf %10, %13 : vector<256x1xf32>
    %cst_4 = arith.constant 3.125000e-02 : f32
    %15 = vector.broadcast %cst_4 : f32 to vector<256x1xf32>
    %16 = arith.mulf %14, %15 : vector<256x1xf32>
    %cst_5 = arith.constant 9.99999974E-6 : f32
    %17 = vector.broadcast %cst_5 : f32 to vector<256x1xf32>
    %18 = arith.addf %16, %17 : vector<256x1xf32>
    %19 = math.rsqrt %18 : vector<256x1xf32>
    %20 = vector.broadcast %19 : vector<256x1xf32> to vector<256x128xf32>
    %21 = arith.mulf %7, %20 : vector<256x128xf32>
    %c0_6 = arith.constant 0 : index
    %c0_7 = arith.constant 0 : index
    %22 = vector.load %arg4[%c0_6, %c0_7] : memref<1x128xf32, #tpu.memory_space<vmem>>, vector<1x128xf32>
    %23 = vector.broadcast %22 : vector<1x128xf32> to vector<256x128xf32>
    %24 = arith.mulf %21, %23 : vector<256x128xf32>
    %c0_8 = arith.constant 0 : index
    %c0_9 = arith.constant 0 : index
    %25 = vector.load %arg5[%c0_8, %c0_9] : memref<1x128xf32, #tpu.memory_space<vmem>>, vector<1x128xf32>
    %26 = vector.broadcast %25 : vector<1x128xf32> to vector<256x128xf32>
    %27 = arith.addf %24, %26 : vector<256x128xf32>
    %28 = arith.truncf %27 : vector<256x128xf32> to vector<256x128xbf16>
    %c0_10 = arith.constant 0 : index
    %c0_11 = arith.constant 0 : index
    %29 = vector.load %arg2[%c0_10, %c0_11] : memref<128x128xbf16, #tpu.memory_space<vmem>>, vector<128x128xbf16>
    %cst_12 = arith.constant dense<0.000000e+00> : vector<256x128xf32>
    %30 = tpu.matmul %28, %29, %cst_12 {dimension_numbers = #tpu.dot_dimension_numbers<[1], [0], [0], [1], [0, 0, 1, 1], [], []>} : vector<256x128xbf16>, vector<128x128xbf16>, vector<256x128xf32> -> vector<256x128xf32>
    %c0_13 = arith.constant 0 : index
    %c0_14 = arith.constant 0 : index
    %31 = vector.load %arg3[%c0_13, %c0_14] : memref<1x128xf32, #tpu.memory_space<vmem>>, vector<1x128xf32>
    %32 = vector.broadcast %31 : vector<1x128xf32> to vector<256x128xf32>
    %33 = arith.addf %30, %32 : vector<256x128xf32>
    %cst_15 = arith.constant dense<0.000000e+00> : vector<256xf32>
    %34 = vector.multi_reduction <add>, %33, %cst_15 [1] : vector<256x128xf32> to vector<256xf32>
    %35 = vector.shape_cast %34 : vector<256xf32> to vector<256x1xf32>
    %cst_16 = arith.constant 3.125000e-02 : f32
    %36 = vector.broadcast %cst_16 : f32 to vector<256x1xf32>
    %37 = arith.mulf %35, %36 : vector<256x1xf32>
    %38 = vector.broadcast %37 : vector<256x1xf32> to vector<256x128xf32>
    %39 = arith.subf %33, %38 : vector<256x128xf32>
    %40 = arith.mulf %39, %39 : vector<256x128xf32>
    %cst_17 = arith.constant dense<0.000000e+00> : vector<256xf32>
    %41 = vector.multi_reduction <add>, %40, %cst_17 [1] : vector<256x128xf32> to vector<256xf32>
    %42 = vector.shape_cast %41 : vector<256xf32> to vector<256x1xf32>
    %43 = arith.mulf %37, %37 : vector<256x1xf32>
    %cst_18 = arith.constant 9.600000e+01 : f32
    %44 = vector.broadcast %cst_18 : f32 to vector<256x1xf32>
    %45 = arith.mulf %44, %43 : vector<256x1xf32>
    %46 = arith.subf %42, %45 : vector<256x1xf32>
    %cst_19 = arith.constant 3.125000e-02 : f32
    %47 = vector.broadcast %cst_19 : f32 to vector<256x1xf32>
    %48 = arith.mulf %46, %47 : vector<256x1xf32>
    %cst_20 = arith.constant 9.99999974E-6 : f32
    %49 = vector.broadcast %cst_20 : f32 to vector<256x1xf32>
    %50 = arith.addf %48, %49 : vector<256x1xf32>
    %51 = math.rsqrt %50 : vector<256x1xf32>
    %52 = vector.broadcast %51 : vector<256x1xf32> to vector<256x128xf32>
    %53 = arith.mulf %39, %52 : vector<256x128xf32>
    %c0_21 = arith.constant 0 : index
    %c0_22 = arith.constant 0 : index
    %54 = vector.load %arg6[%c0_21, %c0_22] : memref<1x128xf32, #tpu.memory_space<vmem>>, vector<1x128xf32>
    %55 = vector.broadcast %54 : vector<1x128xf32> to vector<256x128xf32>
    %56 = arith.mulf %53, %55 : vector<256x128xf32>
    %c0_23 = arith.constant 0 : index
    %c0_24 = arith.constant 0 : index
    %57 = vector.load %arg7[%c0_23, %c0_24] : memref<1x128xf32, #tpu.memory_space<vmem>>, vector<1x128xf32>
    %58 = vector.broadcast %57 : vector<1x128xf32> to vector<256x128xf32>
    %59 = arith.addf %56, %58 : vector<256x128xf32>
    %c0_25 = arith.constant 0 : index
    %c0_26 = arith.constant 0 : index
    %60 = vector.load %arg8[%c0_25, %c0_26] : memref<256x128xf32, #tpu.memory_space<vmem>>, vector<256x128xf32>
    tpu.vector_store %arg8[%c0_25, %c0_26], %59 {strides = array<i32>} : memref<256x128xf32, #tpu.memory_space<vmem>>, vector<256x128xf32>,
    return
  }
  func.func @transform_0(%arg0: i32) -> (i32, i32) {
    %c0_i32 = arith.constant 0 : i32
    %c0_i32_0 = arith.constant 0 : i32
    return %arg0, %c0_i32 : i32, i32
  }
  func.func @transform_1(%arg0: i32) -> (i32, i32) {
    %c0_i32 = arith.constant 0 : i32
    %c0_i32_0 = arith.constant 0 : i32
    %c0_i32_1 = arith.constant 0 : i32
    return %c0_i32, %c0_i32_0 : i32, i32
  }
  func.func @transform_2(%arg0: i32) -> (i32, i32) {
    %c0_i32 = arith.constant 0 : i32
    %c0_i32_0 = arith.constant 0 : i32
    %c0_i32_1 = arith.constant 0 : i32
    return %c0_i32, %c0_i32_0 : i32, i32
  }
  func.func @transform_3(%arg0: i32) -> (i32, i32) {
    %c0_i32 = arith.constant 0 : i32
    %c0_i32_0 = arith.constant 0 : i32
    %c0_i32_1 = arith.constant 0 : i32
    return %c0_i32, %c0_i32_0 : i32, i32
  }
  func.func @transform_4(%arg0: i32) -> (i32, i32) {
    %c0_i32 = arith.constant 0 : i32
    %c0_i32_0 = arith.constant 0 : i32
    %c0_i32_1 = arith.constant 0 : i32
    return %c0_i32, %c0_i32_0 : i32, i32
  }
  func.func @transform_5(%arg0: i32) -> (i32, i32) {
    %c0_i32 = arith.constant 0 : i32
    %c0_i32_0 = arith.constant 0 : i32
    %c0_i32_1 = arith.constant 0 : i32
    return %c0_i32, %c0_i32_0 : i32, i32
  }
  func.func @transform_6(%arg0: i32) -> (i32, i32) {
    %c0_i32 = arith.constant 0 : i32
    %c0_i32_0 = arith.constant 0 : i32
    %c0_i32_1 = arith.constant 0 : i32
    return %c0_i32, %c0_i32_0 : i32, i32
  }
  func.func @transform_7(%arg0: i32) -> (i32, i32) {
    %c0_i32 = arith.constant 0 : i32
    %c0_i32_0 = arith.constant 0 : i32
    return %arg0, %c0_i32 : i32, i32
  }
}

</mosaic_0001>

<bundles_post_ra>
// kernel: patch_embedding_forward.2
= control target key start
LH: loop header
LB: loop body
LE: loop exit
PB: predicated region body
PF: predicated region fallthrough
CT: control target
= control target key end

     0   :  { %s4092_s0 = inlined_call_operand.vmem [shape: bf16[128,128], index: 0, kind: input, shape index: {}]   ;;  %s4093_s1 = inlined_call_operand.vmem [shape: f32[1,128], index: 1, kind: input, shape index: {}]   ;;  %s4094_s2 = inlined_call_operand.vmem [shape: f32[1,128], index: 2, kind: input, shape index: {}]   ;;  %s4095_s3 = inlined_call_operand.vmem [shape: f32[1,128], index: 3, kind: input, shape index: {}]   ;;  %s4096_s4 = inlined_call_operand.vmem [shape: f32[1,128], index: 4, kind: input, shape index: {}]   ;;  %s4097_s5 = inlined_call_operand.vmem [shape: f32[1,128], index: 5, kind: input, shape index: {}]   ;;  %s4098_s6 = inlined_call_operand.vmem [shape: bf16[256,32], index: 6, kind: input, shape index: {}]   ;;  %s4099_s7 = inlined_call_operand.<no memory space> [shape: bf16[], index: 7, kind: input, shape index: {}]   ;;  %s4100_s8 = inlined_call_operand.vmem [shape: f32[256,128], index: 8, kind: output, shape index: {}]  }
   0x1   :  { %v13_v0 = vstv %s4099_s7 }
   0x2   :  { %v2532_v1 = vunpack.i.l.bf16 %v13_v0 }
   0x3   :  { %v41_v2 = vld [vmem:[%s4098_s6] sm:$0xff]   ;;  %v44_v3 = vlaneseq  ;;  %v2136_v5 = vld [vmem:[%s4098_s6 + $0x8] sm:$0xff]   ;;  %v2138_v11 = vld [vmem:[%s4098_s6 + $0x10] sm:$0xff]   ;;  %v2483_v29 = vmov 0.0  }
   0x4   :  { %v2150_v4 = vld [vmem:[%s4098_s6 + $0x40] sm:$0xff]   ;;  %v42_v6 = vunpack.c.l.bf16 %v41_v2  ;;  %v63_v7 = vunpack.c.h.bf16 %v41_v2  ;;  %v2152_v10 = vld [vmem:[%s4098_s6 + $0x48] sm:$0xff]   ;;  %v2154_v12 = vld [vmem:[%s4098_s6 + $0x50] sm:$0xff]   ;;  %v85_v14 = vunpack.c.l.bf16 %v2136_v5  ;;  %v107_v15 = vunpack.c.h.bf16 %v2136_v5 }
   0x5   :  { %v393_v8 = vunpack.c.l.bf16 %v2150_v4  ;;  %v415_v9 = vunpack.c.h.bf16 %v2150_v4  ;;  %v2552_v13 = vand.u32 127, %v44_v3  ;;  %v437_v16 = vunpack.c.l.bf16 %v2152_v10  ;;  %v2140_v17 = vld [vmem:[%s4098_s6 + $0x18] sm:$0xff]   ;;  %v2142_v39 = vld [vmem:[%s4098_s6 + $0x20] sm:$0xff]  }
   0x6   :  { %v459_v18 = vunpack.c.h.bf16 %v2152_v10  ;;  %v129_v19 = vunpack.c.l.bf16 %v2138_v11  ;;  %v151_v20 = vunpack.c.h.bf16 %v2138_v11  ;;  %v481_v21 = vunpack.c.l.bf16 %v2154_v12  ;;  %v2156_v34 = vld [vmem:[%s4098_s6 + $0x58] sm:$0xff]   ;;  %v2158_v52 = vld [vmem:[%s4098_s6 + $0x60] sm:$0xff]  }
   0x7   :  { %vm47_vm0 = vcmp.lt.s32.totalorder %v2552_v13, 32  ;;  %v503_v22 = vunpack.c.h.bf16 %v2154_v12  ;;  %v173_v23 = vunpack.c.l.bf16 %v2140_v17  ;;  %v195_v24 = vunpack.c.h.bf16 %v2140_v17 }
   0x8   :  { %v48_v25 = vsel %vm47_vm0, %v42_v6, %v2532_v1  ;;  %v69_v26 = vsel %vm47_vm0, %v63_v7, %v2532_v1  ;;  %v399_v27 = vsel %vm47_vm0, %v393_v8, %v2532_v1  ;;  %v421_v28 = vsel %vm47_vm0, %v415_v9, %v2532_v1  ;;  %v2144_v6 = vld [vmem:[%s4098_s6 + $0x28] sm:$0xff]  }
   0x9   :  { %v49_v30 = vpack.c.bf16 %v2483_v29, %v48_v25  ;;  %v71_v31 = vpack.c.bf16 %v2483_v29, %v69_v26  ;;  %v401_v32 = vpack.c.bf16 %v2483_v29, %v399_v27  ;;  %v423_v33 = vpack.c.bf16 %v2483_v29, %v421_v28  ;;  %v2146_v28 = vld [vmem:[%s4098_s6 + $0x30] sm:$0xff]  }
   0xa   :  { %v91_v35 = vsel %vm47_vm0, %v85_v14, %v2532_v1  ;;  %v113_v36 = vsel %vm47_vm0, %v107_v15, %v2532_v1  ;;  %v443_v37 = vsel %vm47_vm0, %v437_v16, %v2532_v1  ;;  %v465_v38 = vsel %vm47_vm0, %v459_v18, %v2532_v1  ;;  %v2160_v16 = vld [vmem:[%s4098_s6 + $0x68] sm:$0xff]  }
   0xb   :  { %51 = vst [vmem:[#allocation7] sm:$0xf] %v49_v30  ;;  %73 = vst [vmem:[#allocation7 + $0x4] sm:$0xf] %v71_v31  ;;  %v93_v40 = vpack.c.bf16 %v2483_v29, %v91_v35  ;;  %v115_v41 = vpack.c.bf16 %v2483_v29, %v113_v36  ;;  %v445_v42 = vpack.c.bf16 %v2483_v29, %v443_v37  ;;  %v525_v55 = vunpack.c.l.bf16 %v2156_v34  ;;  %v2162_v30 = vld [vmem:[%s4098_s6 + $0x70] sm:$0xff]   ;;  %v2148_v35 = vld [vmem:[%s4098_s6 + $0x38] sm:$0xff]  }
   0xc   :  { %403 = vst [vmem:[#allocation7 + $0x40] sm:$0xf] %v401_v32  ;;  %425 = vst [vmem:[#allocation7 + $0x44] sm:$0xf] %v423_v33  ;;  %v467_v43 = vpack.c.bf16 %v2483_v29, %v465_v38  ;;  %v135_v44 = vsel %vm47_vm0, %v129_v19, %v2532_v1  ;;  %v157_v45 = vsel %vm47_vm0, %v151_v20, %v2532_v1  ;;  %v547_v56 = vunpack.c.h.bf16 %v2156_v34 }
   0xd   :  { %v487_v46 = vsel %vm47_vm0, %v481_v21, %v2532_v1  ;;  %v509_v47 = vsel %vm47_vm0, %v503_v22, %v2532_v1  ;;  %95 = vst [vmem:[#allocation7 + $0x8] sm:$0xf] %v93_v40  ;;  %117 = vst [vmem:[#allocation7 + $0xc] sm:$0xf] %v115_v41  ;;  %v137_v48 = vpack.c.bf16 %v2483_v29, %v135_v44  ;;  %v217_v59 = vunpack.c.l.bf16 %v2142_v39 }
   0xe   :  { %447 = vst [vmem:[#allocation7 + $0x48] sm:$0xf] %v445_v42  ;;  %469 = vst [vmem:[#allocation7 + $0x4c] sm:$0xf] %v467_v43  ;;  %v159_v49 = vpack.c.bf16 %v2483_v29, %v157_v45  ;;  %v489_v50 = vpack.c.bf16 %v2483_v29, %v487_v46  ;;  %v511_v51 = vpack.c.bf16 %v2483_v29, %v509_v47  ;;  %v239_v60 = vunpack.c.h.bf16 %v2142_v39  ;;  %v2164_v45 = vld [vmem:[%s4098_s6 + $0x78] sm:$0xff]  }
   0xf   :  { %v179_v53 = vsel %vm47_vm0, %v173_v23, %v2532_v1  ;;  %v201_v54 = vsel %vm47_vm0, %v195_v24, %v2532_v1  ;;  %139 = vst [vmem:[#allocation7 + $0x10] sm:$0xf] %v137_v48  ;;  %v531_v61 = vsel %vm47_vm0, %v525_v55, %v2532_v1  ;;  %v553_v62 = vsel %vm47_vm0, %v547_v56, %v2532_v1 }
  0x10   :  { %161 = vst [vmem:[#allocation7 + $0x14] sm:$0xf] %v159_v49  ;;  %491 = vst [vmem:[#allocation7 + $0x50] sm:$0xf] %v489_v50  ;;  %v181_v57 = vpack.c.bf16 %v2483_v29, %v179_v53  ;;  %v203_v58 = vpack.c.bf16 %v2483_v29, %v201_v54  ;;  %v569_v63 = vunpack.c.l.bf16 %v2158_v52  ;;  %v591_v0 = vunpack.c.h.bf16 %v2158_v52 }
  0x11   :  { %513 = vst [vmem:[#allocation7 + $0x54] sm:$0xf] %v511_v51  ;;  %v533_v2 = vpack.c.bf16 %v2483_v29, %v531_v61  ;;  %v555_v3 = vpack.c.bf16 %v2483_v29, %v553_v62  ;;  %v223_v4 = vsel %vm47_vm0, %v217_v59, %v2532_v1  ;;  %v245_v5 = vsel %vm47_vm0, %v239_v60, %v2532_v1 }
  0x12   :  { %183 = vst [vmem:[#allocation7 + $0x18] sm:$0xf] %v181_v57  ;;  %205 = vst [vmem:[#allocation7 + $0x1c] sm:$0xf] %v203_v58  ;;  %v2640_v7 = vld [vmem:[#allocation7] sm:$0xff]   ;;  %v225_v9 = vpack.c.bf16 %v2483_v29, %v223_v4  ;;  %v247_v10 = vpack.c.bf16 %v2483_v29, %v245_v5  ;;  %v575_v11 = vsel %vm47_vm0, %v569_v63, %v2532_v1  ;;  %v261_v19 = vunpack.c.l.bf16 %v2144_v6 }
  0x13   :  { %v2642_v8 = vld [vmem:[#allocation7 + $0x40] sm:$0xff]   ;;  %v597_v12 = vsel %vm47_vm0, %v591_v0, %v2532_v1  ;;  %v2181_v14 = vunpack.c.l.bf16 %v2640_v7  ;;  %535 = vst [vmem:[#allocation7 + $0x58] sm:$0xf] %v533_v2  ;;  %557 = vst [vmem:[#allocation7 + $0x5c] sm:$0xf] %v555_v3  ;;  %v577_v17 = vpack.c.bf16 %v2483_v29, %v575_v11  ;;  %v283_v20 = vunpack.c.h.bf16 %v2144_v6 }
  0x14   :  { %v2213_v15 = vunpack.c.l.bf16 %v2642_v8  ;;  %227 = vst [vmem:[#allocation7 + $0x20] sm:$0xf] %v225_v9  ;;  %249 = vst [vmem:[#allocation7 + $0x24] sm:$0xf] %v247_v10  ;;  %v599_v18 = vpack.c.bf16 %v2483_v29, %v597_v12  ;;  %v2182_v21 = vunpack.c.h.bf16 %v2640_v7  ;;  %v2214_v22 = vunpack.c.h.bf16 %v2642_v8  ;;  %v2665_v23 = vld [vmem:[#allocation7 + $0x8] sm:$0xff]  }
  0x15   :  { %799 = vadd.xlane.f32.xlu0 %v2181_v14  ;;  %579 = vst [vmem:[#allocation7 + $0x60] sm:$0xf] %v577_v17  ;;  %v267_v24 = vsel %vm47_vm0, %v261_v19, %v2532_v1  ;;  %v289_v25 = vsel %vm47_vm0, %v283_v20, %v2532_v1  ;;  %v613_v26 = vunpack.c.l.bf16 %v2160_v16  ;;  %v635_v27 = vunpack.c.h.bf16 %v2160_v16  ;;  %v2696_v38 = vld [vmem:[#allocation7 + $0x48] sm:$0xff]  }
  0x16   :  { %831 = vadd.xlane.f32.xlu1 %v2213_v15  ;;  %601 = vst [vmem:[#allocation7 + $0x64] sm:$0xf] %v599_v18  ;;  %v269_v31 = vpack.c.bf16 %v2483_v29, %v267_v24  ;;  %v291_v32 = vpack.c.bf16 %v2483_v29, %v289_v25  ;;  %v2185_v36 = vunpack.c.l.bf16 %v2665_v23  ;;  %v2186_v37 = vunpack.c.h.bf16 %v2665_v23 }
  0x17   :  { %v619_v33 = vsel %vm47_vm0, %v613_v26, %v2532_v1  ;;  %v641_v34 = vsel %vm47_vm0, %v635_v27, %v2532_v1  ;;  %v305_v41 = vunpack.c.l.bf16 %v2146_v28  ;;  %v327_v42 = vunpack.c.h.bf16 %v2146_v28  ;;  %v2720_v56 = vld [vmem:[#allocation7 + $0x10] sm:$0xff]  }
  0x18   :  { %v621_v39 = vpack.c.bf16 %v2483_v29, %v619_v33  ;;  %v643_v40 = vpack.c.bf16 %v2483_v29, %v641_v34  ;;  %271 = vst [vmem:[#allocation7 + $0x28] sm:$0xf] %v269_v31  ;;  %293 = vst [vmem:[#allocation7 + $0x2c] sm:$0xf] %v291_v32  ;;  %v657_v43 = vunpack.c.l.bf16 %v2162_v30  ;;  %v679_v44 = vunpack.c.h.bf16 %v2162_v30  ;;  %v2745_v6 = vld [vmem:[#allocation7 + $0x50] sm:$0xff]  }
  0x19   :  { %801 = vadd.xlane.f32.xlu0 %v2182_v21  ;;  %v349_v46 = vunpack.c.l.bf16 %v2148_v35  ;;  %v371_v47 = vunpack.c.h.bf16 %v2148_v35  ;;  %v2217_v48 = vunpack.c.l.bf16 %v2696_v38  ;;  %v2218_v49 = vunpack.c.h.bf16 %v2696_v38  ;;  %v2757_v16 = vld [vmem:[#allocation7 + $0x18] sm:$0xff]  }
  0x1a   :  { %833 = vadd.xlane.f32.xlu1 %v2214_v22  ;;  %623 = vst [vmem:[#allocation7 + $0x68] sm:$0xf] %v621_v39  ;;  %645 = vst [vmem:[#allocation7 + $0x6c] sm:$0xf] %v643_v40  ;;  %v311_v50 = vsel %vm47_vm0, %v305_v41, %v2532_v1  ;;  %v333_v51 = vsel %vm47_vm0, %v327_v42, %v2532_v1  ;;  %v663_v54 = vsel %vm47_vm0, %v657_v43, %v2532_v1 }
  0x1b   :  { %v313_v52 = vpack.c.bf16 %v2483_v29, %v311_v50  ;;  %v335_v53 = vpack.c.bf16 %v2483_v29, %v333_v51  ;;  %v701_v55 = vunpack.c.l.bf16 %v2164_v45  ;;  %v665_v57 = vpack.c.bf16 %v2483_v29, %v663_v54  ;;  %v2773_v19 = vld [vmem:[#allocation7 + $0x20] sm:$0xff]  }
  0x1c   :  { %v685_v58 = vsel %vm47_vm0, %v679_v44, %v2532_v1  ;;  %v355_v60 = vsel %vm47_vm0, %v349_v46, %v2532_v1  ;;  %v377_v61 = vsel %vm47_vm0, %v371_v47, %v2532_v1  ;;  %v723_v3 = vunpack.c.h.bf16 %v2164_v45 }
  0x1d   :  { %803 = vadd.xlane.f32.xlu0 %v2185_v36  ;;  %315 = vst [vmem:[#allocation7 + $0x30] sm:$0xf] %v313_v52  ;;  %337 = vst [vmem:[#allocation7 + $0x34] sm:$0xf] %v335_v53  ;;  %v687_v59 = vpack.c.bf16 %v2483_v29, %v685_v58  ;;  %v707_v62 = vsel %vm47_vm0, %v701_v55, %v2532_v1  ;;  %v357_v63 = vpack.c.bf16 %v2483_v29, %v355_v60  ;;  %v2781_v25 = vld [vmem:[#allocation7 + $0x60] sm:$0xff]  }
  0x1e   :  { %805 = vadd.xlane.f32.xlu1 %v2186_v37  ;;  %667 = vst [vmem:[#allocation7 + $0x70] sm:$0xf] %v665_v57  ;;  %v379_v0 = vpack.c.bf16 %v2483_v29, %v377_v61  ;;  %v709_v2 = vpack.c.bf16 %v2483_v29, %v707_v62  ;;  %v2189_v4 = vunpack.c.l.bf16 %v2720_v56  ;;  %v2190_v5 = vunpack.c.h.bf16 %v2720_v56 }
  0x1f   :  { %689 = vst [vmem:[#allocation7 + $0x74] sm:$0xf] %v687_v59  ;;  %359 = vst [vmem:[#allocation7 + $0x38] sm:$0xf] %v357_v63  ;;  %v729_v9 = vsel %vm47_vm0, %v723_v3, %v2532_v1  ;;  %v2221_v11 = vunpack.c.l.bf16 %v2745_v6  ;;  %v2222_v12 = vunpack.c.h.bf16 %v2745_v6  ;;  %v2193_v1 = vunpack.c.l.bf16 %v2757_v16  ;;  %v2789_v28 = vld [vmem:[#allocation7 + $0x28] sm:$0xff]  }
  0x20   :  { %381 = vst [vmem:[#allocation7 + $0x3c] sm:$0xf] %v379_v0  ;;  %711 = vst [vmem:[#allocation7 + $0x78] sm:$0xf] %v709_v2  ;;  %v731_v10 = vpack.c.bf16 %v2483_v29, %v729_v9  ;;  %v2194_v13 = vunpack.c.h.bf16 %v2757_v16  ;;  %v2765_v29 = vld [vmem:[#allocation7 + $0x58] sm:$0xff]   ;;  %v2197_v20 = vunpack.c.l.bf16 %v2773_v19  ;;  %v2198_v24 = vunpack.c.h.bf16 %v2773_v19 }
  0x21   :  { %835 = vadd.xlane.f32.xlu0 %v2217_v48  ;;  %v2225_v17 = vunpack.c.l.bf16 %v2765_v29  ;;  %v2226_v18 = vunpack.c.h.bf16 %v2765_v29  ;;  %v2229_v26 = vunpack.c.l.bf16 %v2781_v25  ;;  %v2230_v27 = vunpack.c.h.bf16 %v2781_v25  ;;  %v2797_v32 = vld [vmem:[#allocation7 + $0x68] sm:$0xff]  }
  0x22   :  { %837 = vadd.xlane.f32.xlu1 %v2218_v49  ;;  %733 = vst [vmem:[#allocation7 + $0x7c] sm:$0xf] %v731_v10  ;;  %v2201_v30 = vunpack.c.l.bf16 %v2789_v28  ;;  %v2202_v31 = vunpack.c.h.bf16 %v2789_v28  ;;  %v2233_v33 = vunpack.c.l.bf16 %v2797_v32  ;;  %v2234_v34 = vunpack.c.h.bf16 %v2797_v32 }
  0x24   :  { %v2805_v35 = vld [vmem:[#allocation7 + $0x30] sm:$0xff]  }
  0x25   :  { %807 = vadd.xlane.f32.xlu0 %v2189_v4  ;;  %v2205_v39 = vunpack.c.l.bf16 %v2805_v35  ;;  %v2206_v40 = vunpack.c.h.bf16 %v2805_v35 }
  0x26   :  { %809 = vadd.xlane.f32.xlu1 %v2190_v5  ;;  %v2813_v41 = vld [vmem:[#allocation7 + $0x70] sm:$0xff]  }
  0x27   :  { %v4106_v42 = vunpack.c.l.bf16 %v2813_v41  ;;  %v4105_v43 = vunpack.c.h.bf16 %v2813_v41  ;;  %v2821_v44 = vld [vmem:[#allocation7 + $0x38] sm:$0xff]  }
  0x28   :  { %v4104_v45 = vunpack.c.l.bf16 %v2821_v44  ;;  %v4103_v46 = vunpack.c.h.bf16 %v2821_v44 }
  0x29   :  { %839 = vadd.xlane.f32.xlu0 %v2221_v11  ;;  %v2829_v47 = vld [vmem:[#allocation7 + $0x78] sm:$0xff]  }
  0x2a   :  { %841 = vadd.xlane.f32.xlu1 %v2222_v12  ;;  %v4102_v50 = vunpack.c.l.bf16 %v2829_v47  ;;  %v4101_v51 = vunpack.c.h.bf16 %v2829_v47 }
  0x2d   :  { %811 = vadd.xlane.f32.xlu0 %v2193_v1 }
  0x2e   :  { %813 = vadd.xlane.f32.xlu1 %v2194_v13 }
  0x31   :  { %843 = vadd.xlane.f32.xlu0 %v2225_v17 }
  0x32   :  { %845 = vadd.xlane.f32.xlu1 %v2226_v18 }
  0x35   :  { %815 = vadd.xlane.f32.xlu0 %v2197_v20 }
  0x36   :  { %817 = vadd.xlane.f32.xlu1 %v2198_v24 }
  0x39   :  { %847 = vadd.xlane.f32.xlu0 %v2229_v26 }
  0x3a   :  { %849 = vadd.xlane.f32.xlu1 %v2230_v27 }
  0x3d   :  { %819 = vadd.xlane.f32.xlu0 %v2201_v30 }
  0x3e   :  { %821 = vadd.xlane.f32.xlu1 %v2202_v31 }
  0x41   :  { %851 = vadd.xlane.f32.xlu0 %v2233_v33 }
  0x42   :  { %853 = vadd.xlane.f32.xlu1 %v2234_v34 }
  0x45   :  { %823 = vadd.xlane.f32.xlu0 %v2205_v39 }
  0x46   :  { %825 = vadd.xlane.f32.xlu1 %v2206_v40 }
  0x49   :  { %855 = vadd.xlane.f32.xlu0 %v4106_v42 }
  0x4a   :  { %857 = vadd.xlane.f32.xlu1 %v4105_v43 }
  0x4d   :  { %827 = vadd.xlane.f32.xlu0 %v4104_v45 }
  0x4e   :  { %829 = vadd.xlane.f32.xlu1 %v4103_v46 }
  0x51   :  { %859 = vadd.xlane.f32.xlu0 %v4102_v50 }
  0x52   :  { %861 = vadd.xlane.f32.xlu1 %v4101_v51 }
  0xa2   :  { %v800_v52 = vpop.xlane.xlu0 %799 }
  0xa3   :  { %v832_v53 = vpop.xlane.xlu1 %831  ;;  %v2841_v54 = vmul.f32 0.03125, %v800_v52 }
  0xa4   :  { %v2843_v55 = vmul.f32 0.03125, %v832_v53 }
  0xa5   :  { %v2848_v57 = vsub.f32 %v2181_v14, %v2841_v54 }
  0xa6   :  { %v2853_v58 = vsub.f32 %v2213_v15, %v2843_v55  ;;  %v802_v59 = vpop.xlane.xlu0 %801 }
  0xa7   :  { %v834_v60 = vpop.xlane.xlu1 %833  ;;  %v2855_v61 = vmul.f32 0.03125, %v802_v59  ;;  %v927_v62 = vmul.f32 %v2848_v57, %v2848_v57 }
  0xa8   :  { %v2859_v63 = vmul.f32 0.03125, %v834_v60  ;;  %v943_v0 = vmul.f32 %v2853_v58, %v2853_v58 }
  0xa9   :  { %959 = vadd.xlane.f32.xlu0 %v927_v62  ;;  %v2866_v14 = vsub.f32 %v2182_v21, %v2855_v61 }
  0xaa   :  { %v2871_v15 = vsub.f32 %v2214_v22, %v2859_v63  ;;  %v804_v2 = vpop.xlane.xlu0 %803 }
  0xab   :  { %v806_v3 = vpop.xlane.xlu1 %805  ;;  %v2873_v9 = vmul.f32 0.03125, %v804_v2  ;;  %v928_v10 = vmul.f32 %v2866_v14, %v2866_v14 }
  0xac   :  { %v2877_v52 = vmul.f32 0.03125, %v806_v3  ;;  %v944_v7 = vmul.f32 %v2871_v15, %v2871_v15 }
  0xad   :  { %991 = vadd.xlane.f32.xlu0 %v943_v0  ;;  %961 = vadd.xlane.f32.xlu1 %v928_v10  ;;  %v2884_v8 = vsub.f32 %v2185_v36, %v2873_v9 }
  0xae   :  { %v2889_v21 = vsub.f32 %v2186_v37, %v2877_v52  ;;  %v836_v22 = vpop.xlane.xlu0 %835 }
  0xaf   :  { %v838_v53 = vpop.xlane.xlu1 %837  ;;  %v2891_v59 = vmul.f32 0.03125, %v836_v22  ;;  %v929_v60 = vmul.f32 %v2884_v8, %v2884_v8 }
  0xb0   :  { %v2895_v62 = vmul.f32 0.03125, %v838_v53  ;;  %v930_v36 = vmul.f32 %v2889_v21, %v2889_v21 }
  0xb1   :  { %993 = vadd.xlane.f32.xlu1 %v944_v7  ;;  %963 = vadd.xlane.f32.xlu0 %v929_v60  ;;  %v2902_v23 = vsub.f32 %v2217_v48, %v2891_v59 }
  0xb2   :  { %v2907_v37 = vsub.f32 %v2218_v49, %v2895_v62  ;;  %v808_v0 = vpop.xlane.xlu0 %807 }
  0xb3   :  { %v810_v2 = vpop.xlane.xlu1 %809  ;;  %v2909_v3 = vmul.f32 0.03125, %v808_v0  ;;  %v945_v10 = vmul.f32 %v2902_v23, %v2902_v23 }
  0xb4   :  { %v2913_v7 = vmul.f32 0.03125, %v810_v2  ;;  %v946_v48 = vmul.f32 %v2907_v37, %v2907_v37 }
  0xb5   :  { %965 = vadd.xlane.f32.xlu1 %v930_v36  ;;  %995 = vadd.xlane.f32.xlu0 %v945_v10  ;;  %v2920_v38 = vsub.f32 %v2189_v4, %v2909_v3 }
  0xb6   :  { %v2925_v49 = vsub.f32 %v2190_v5, %v2913_v7  ;;  %v840_v22 = vpop.xlane.xlu0 %839 }
  0xb7   :  { %v842_v53 = vpop.xlane.xlu1 %841  ;;  %v2927_v60 = vmul.f32 0.03125, %v840_v22  ;;  %v931_v36 = vmul.f32 %v2920_v38, %v2920_v38 }
  0xb8   :  { %v2931_v0 = vmul.f32 0.03125, %v842_v53  ;;  %v932_v4 = vmul.f32 %v2925_v49, %v2925_v49 }
  0xb9   :  { %997 = vadd.xlane.f32.xlu1 %v946_v48  ;;  %967 = vadd.xlane.f32.xlu0 %v931_v36  ;;  %v2938_v56 = vsub.f32 %v2221_v11, %v2927_v60  ;;  %v2347_v36 = vld [vmem:[%s4092_s0] sm:$0xff]  }
  0xba   :  { %v2943_v5 = vsub.f32 %v2222_v12, %v2931_v0  ;;  %v812_v2 = vpop.xlane.xlu0 %811  ;;  %2282 = vmatprep.subr.bf16.mxu0 %v2347_v36  ;;  %2330 = vmatprep.subr.bf16.mxu1 %v2347_v36 }
  0xbb   :  { %v814_v10 = vpop.xlane.xlu1 %813  ;;  %v2945_v22 = vmul.f32 0.03125, %v812_v2  ;;  %v947_v48 = vmul.f32 %v2938_v56, %v2938_v56  ;;  %2283 = vmatpush3.bf16.msra.mxu0 %v2347_v36  ;;  %2338 = vmatpush3.bf16.msra.mxu1 %v2347_v36 }
  0xbc   :  { %v2949_v53 = vmul.f32 0.03125, %v814_v10  ;;  %v948_v6 = vmul.f32 %v2943_v5, %v2943_v5 }
  0xbd   :  { %969 = vadd.xlane.f32.xlu1 %v932_v4  ;;  %999 = vadd.xlane.f32.xlu0 %v947_v48  ;;  %v2959_v11 = vsub.f32 %v2193_v1, %v2945_v22  ;;  %v2348_v1 = vld [vmem:[%s4092_s0 + $0x8] sm:$0xff]  }
  0xbe   :  { %v2964_v12 = vsub.f32 %v2194_v13, %v2949_v53  ;;  %v844_v2 = vpop.xlane.xlu0 %843  ;;  %2284 = vmatprep.subr.bf16.mxu0 %v2348_v1  ;;  %2331 = vmatprep.subr.bf16.mxu1 %v2348_v1 }
  0xbf   :  { %v846_v10 = vpop.xlane.xlu1 %845  ;;  %v2966_v51 = vmul.f32 0.03125, %v844_v2  ;;  %v933_v4 = vmul.f32 %v2959_v11, %v2959_v11  ;;  %2285 = vmatpush3.bf16.msra.mxu0 %v2348_v1  ;;  %2339 = vmatpush3.bf16.msra.mxu1 %v2348_v1 }
  0xc0   :  { %v2970_v48 = vmul.f32 0.03125, %v846_v10  ;;  %v934_v16 = vmul.f32 %v2964_v12, %v2964_v12 }
  0xc1   :  { %1001 = vadd.xlane.f32.xlu1 %v948_v6  ;;  %971 = vadd.xlane.f32.xlu0 %v933_v4  ;;  %v2980_v13 = vsub.f32 %v2225_v17, %v2966_v51  ;;  %v2349_v17 = vld [vmem:[%s4092_s0 + $0x10] sm:$0xff]  }
  0xc2   :  { %v2985_v2 = vsub.f32 %v2226_v18, %v2970_v48  ;;  %v816_v10 = vpop.xlane.xlu0 %815  ;;  %2286 = vmatprep.subr.bf16.mxu0 %v2349_v17  ;;  %2332 = vmatprep.subr.bf16.mxu1 %v2349_v17 }
  0xc3   :  { %v818_v50 = vpop.xlane.xlu1 %817  ;;  %v2987_v36 = vmul.f32 0.03125, %v816_v10  ;;  %v949_v6 = vmul.f32 %v2980_v13, %v2980_v13  ;;  %2287 = vmatpush3.bf16.msra.mxu0 %v2349_v17  ;;  %2340 = vmatpush3.bf16.msra.mxu1 %v2349_v17 }
  0xc4   :  { %v2991_v4 = vmul.f32 0.03125, %v818_v50  ;;  %v950_v29 = vmul.f32 %v2985_v2, %v2985_v2 }
  0xc5   :  { %973 = vadd.xlane.f32.xlu1 %v934_v16  ;;  %1003 = vadd.xlane.f32.xlu0 %v949_v6  ;;  %v3001_v18 = vsub.f32 %v2197_v20, %v2987_v36  ;;  %v2350_v20 = vld [vmem:[%s4092_s0 + $0x18] sm:$0xff]  }
  0xc6   :  { %v3006_v50 = vsub.f32 %v2198_v24, %v2991_v4  ;;  %v848_v10 = vpop.xlane.xlu0 %847  ;;  %2288 = vmatprep.subr.bf16.mxu0 %v2350_v20  ;;  %2333 = vmatprep.subr.bf16.mxu1 %v2350_v20 }
  0xc7   :  { %v850_v46 = vpop.xlane.xlu1 %849  ;;  %v3008_v1 = vmul.f32 0.03125, %v848_v10  ;;  %v935_v16 = vmul.f32 %v3001_v18, %v3001_v18  ;;  %2289 = vmatpush3.bf16.msra.mxu0 %v2350_v20  ;;  %2341 = vmatpush3.bf16.msra.mxu1 %v2350_v20 }
  0xc8   :  { %4138 = vst [vmem:[#allocation8_spill] sm:$0xff] %v3006_v50  ;;  %v3012_v6 = vmul.f32 0.03125, %v850_v46  ;;  %v936_v19 = vmul.f32 %v3006_v50, %v3006_v50 }
  0xc9   :  { %1005 = vadd.xlane.f32.xlu1 %v950_v29  ;;  %975 = vadd.xlane.f32.xlu0 %v935_v16  ;;  %v3022_v24 = vsub.f32 %v2229_v26, %v3008_v1  ;;  %v2351_v26 = vld [vmem:[%s4092_s0 + $0x20] sm:$0xff]  }
  0xca   :  { %v3027_v46 = vsub.f32 %v2230_v27, %v3012_v6  ;;  %v820_v10 = vpop.xlane.xlu0 %819  ;;  %2290 = vmatprep.subr.bf16.mxu0 %v2351_v26  ;;  %2334 = vmatprep.subr.bf16.mxu1 %v2351_v26 }
  0xcb   :  { %4139 = vst [vmem:[#allocation9_spill] sm:$0xff] %v3022_v24  ;;  %v822_v45 = vpop.xlane.xlu1 %821  ;;  %v3029_v17 = vmul.f32 0.03125, %v820_v10  ;;  %v951_v29 = vmul.f32 %v3022_v24, %v3022_v24  ;;  %2291 = vmatpush3.bf16.msra.mxu0 %v2351_v26  ;;  %2342 = vmatpush3.bf16.msra.mxu1 %v2351_v26 }
  0xcc   :  { %4140 = vst [vmem:[#allocation10_spill] sm:$0xff] %v3027_v46  ;;  %v3033_v16 = vmul.f32 0.03125, %v822_v45  ;;  %v952_v25 = vmul.f32 %v3027_v46, %v3027_v46 }
  0xcd   :  { %977 = vadd.xlane.f32.xlu1 %v936_v19  ;;  %1007 = vadd.xlane.f32.xlu0 %v951_v29  ;;  %v3043_v27 = vsub.f32 %v2201_v30, %v3029_v17  ;;  %v2352_v30 = vld [vmem:[%s4092_s0 + $0x28] sm:$0xff]  }
  0xce   :  { %v3048_v45 = vsub.f32 %v2202_v31, %v3033_v16  ;;  %v852_v10 = vpop.xlane.xlu0 %851  ;;  %2292 = vmatprep.subr.bf16.mxu0 %v2352_v30  ;;  %2335 = vmatprep.subr.bf16.mxu1 %v2352_v30 }
  0xcf   :  { %4141 = vst [vmem:[#allocation11_spill] sm:$0xff] %v3043_v27  ;;  %v854_v43 = vpop.xlane.xlu1 %853  ;;  %v3050_v20 = vmul.f32 0.03125, %v852_v10  ;;  %v937_v19 = vmul.f32 %v3043_v27, %v3043_v27  ;;  %2293 = vmatpush3.bf16.msra.mxu0 %v2352_v30  ;;  %2343 = vmatpush3.bf16.msra.mxu1 %v2352_v30 }
  0xd0   :  { %4142 = vst [vmem:[#allocation12_spill] sm:$0xff] %v3048_v45  ;;  %v3054_v29 = vmul.f32 0.03125, %v854_v43  ;;  %v938_v28 = vmul.f32 %v3048_v45, %v3048_v45 }
  0xd1   :  { %1009 = vadd.xlane.f32.xlu1 %v952_v25  ;;  %979 = vadd.xlane.f32.xlu0 %v937_v19  ;;  %v3064_v31 = vsub.f32 %v2233_v33, %v3050_v20  ;;  %v2353_v33 = vld [vmem:[%s4092_s0 + $0x30] sm:$0xff]  }
  0xd2   :  { %v3069_v43 = vsub.f32 %v2234_v34, %v3054_v29  ;;  %v824_v10 = vpop.xlane.xlu0 %823  ;;  %2294 = vmatprep.subr.bf16.mxu0 %v2353_v33  ;;  %2336 = vmatprep.subr.bf16.mxu1 %v2353_v33 }
  0xd3   :  { %4143 = vst [vmem:[#allocation13_spill] sm:$0xff] %v3064_v31  ;;  %v826_v42 = vpop.xlane.xlu1 %825  ;;  %v3071_v26 = vmul.f32 0.03125, %v824_v10  ;;  %v953_v25 = vmul.f32 %v3064_v31, %v3064_v31  ;;  %2295 = vmatpush3.bf16.msra.mxu0 %v2353_v33  ;;  %2344 = vmatpush3.bf16.msra.mxu1 %v2353_v33 }
  0xd4   :  { %4144 = vst [vmem:[#allocation14_spill] sm:$0xff] %v3069_v43  ;;  %v3075_v19 = vmul.f32 0.03125, %v826_v42  ;;  %v954_v32 = vmul.f32 %v3069_v43, %v3069_v43 }
  0xd5   :  { %981 = vadd.xlane.f32.xlu1 %v938_v28  ;;  %1011 = vadd.xlane.f32.xlu0 %v953_v25  ;;  %v3085_v34 = vsub.f32 %v2205_v39, %v3071_v26  ;;  %v2354_v39 = vld [vmem:[%s4092_s0 + $0x38] sm:$0xff]  }
  0xd6   :  { %v3090_v42 = vsub.f32 %v2206_v40, %v3075_v19  ;;  %v856_v10 = vpop.xlane.xlu0 %855  ;;  %v4147_v40 = vunpack.c.l.bf16 %v2813_v41  ;;  %2296 = vmatprep.subr.bf16.mxu0 %v2354_v39  ;;  %2337 = vmatprep.subr.bf16.mxu1 %v2354_v39 }
  0xd7   :  { %4145 = vst [vmem:[#allocation15_spill] sm:$0xff] %v3085_v34  ;;  %v858_v31 = vpop.xlane.xlu1 %857  ;;  %v3092_v30 = vmul.f32 0.03125, %v856_v10  ;;  %v939_v28 = vmul.f32 %v3085_v34, %v3085_v34  ;;  %2297 = vmatpush3.bf16.msra.mxu0 %v2354_v39  ;;  %2345 = vmatpush3.bf16.msra.mxu1 %v2354_v39 }
  0xd8   :  { %4146 = vst [vmem:[#allocation16_spill] sm:$0xff] %v3090_v42  ;;  %v3096_v25 = vmul.f32 0.03125, %v858_v31  ;;  %v940_v35 = vmul.f32 %v3090_v42, %v3090_v42  ;;  %v4149_v31 = vunpack.c.h.bf16 %v2813_v41 }
  0xd9   :  { %1013 = vadd.xlane.f32.xlu1 %v954_v32  ;;  %983 = vadd.xlane.f32.xlu0 %v939_v28  ;;  %v3106_v10 = vsub.f32 %v4147_v40, %v3092_v30  ;;  %v4151_v40 = vunpack.c.l.bf16 %v2821_v44 }
  0xda   :  { %v3111_v34 = vsub.f32 %v4149_v31, %v3096_v25  ;;  %v828_v43 = vpop.xlane.xlu0 %827 }
  0xdb   :  { %4148 = vst [vmem:[#allocation17_spill] sm:$0xff] %v3106_v10  ;;  %v830_v45 = vpop.xlane.xlu1 %829  ;;  %v3113_v33 = vmul.f32 0.03125, %v828_v43  ;;  %v955_v32 = vmul.f32 %v3106_v10, %v3106_v10  ;;  %v4153_v43 = vunpack.c.h.bf16 %v2821_v44  ;;  %v4158_v44 = vunpack.c.h.bf16 %v2829_v47 }
  0xdc   :  { %4150 = vst [vmem:[#allocation18_spill] sm:$0xff] %v3111_v34  ;;  %v3117_v28 = vmul.f32 0.03125, %v830_v45  ;;  %v956_v41 = vmul.f32 %v3111_v34, %v3111_v34 }
  0xdd   :  { %985 = vadd.xlane.f32.xlu1 %v940_v35  ;;  %1015 = vadd.xlane.f32.xlu0 %v955_v32  ;;  %v3124_v31 = vsub.f32 %v4151_v40, %v3113_v33  ;;  %v4156_v32 = vunpack.c.l.bf16 %v2829_v47  ;;  %v1024_v47 = vmul.f32 %v2855_v61, %v2855_v61  ;;  %v1042_v61 = vmul.f32 %v2895_v62, %v2895_v62 }
  0xde   :  { %v3129_v42 = vsub.f32 %v4153_v43, %v3117_v28  ;;  %v860_v10 = vpop.xlane.xlu0 %859  ;;  %v1044_v62 = vmul.f32 %v2931_v0, %v2931_v0 }
  0xdf   :  { %4152 = vst [vmem:[#allocation19_spill] sm:$0xff] %v3124_v31  ;;  %v862_v45 = vpop.xlane.xlu1 %861  ;;  %v3131_v27 = vmul.f32 0.03125, %v860_v10  ;;  %v941_v39 = vmul.f32 %v3124_v31, %v3124_v31 }
  0xe0   :  { %4154 = vst [vmem:[#allocation20_spill] sm:$0xff] %v3129_v42  ;;  %v3135_v35 = vmul.f32 0.03125, %v862_v45  ;;  %v942_v10 = vmul.f32 %v3129_v42, %v3129_v42 }
  0xe1   :  { %v3140_v34 = vsub.f32 %v4156_v32, %v3131_v27  ;;  %1017 = vadd.xlane.f32.xlu1 %v956_v41  ;;  %987 = vadd.xlane.f32.xlu0 %v941_v39  ;;  %v1023_v41 = vmul.f32 %v2841_v54, %v2841_v54  ;;  %v1039_v32 = vmul.f32 %v2843_v55, %v2843_v55 }
  0xe2   :  { %4155 = vst [vmem:[#allocation21_spill] sm:$0xff] %v3135_v35  ;;  %v3145_v40 = vsub.f32 %v4158_v44, %v3135_v35  ;;  %v1040_v44 = vmul.f32 %v2859_v63, %v2859_v63  ;;  %v1041_v54 = vmul.f32 %v2891_v59, %v2891_v59  ;;  %v1027_v55 = vmul.f32 %v2909_v3, %v2909_v3 }
  0xe3   :  { %4157 = vst [vmem:[#allocation22_spill] sm:$0xff] %v3140_v34  ;;  %v957_v43 = vmul.f32 %v3140_v34, %v3140_v34  ;;  %v1055_v39 = vmul.f32 96.0, %v1023_v41  ;;  %v1028_v63 = vmul.f32 %v2913_v7, %v2913_v7  ;;  %v1071_v42 = vmul.f32 96.0, %v1039_v32 }
  0xe4   :  { %4159 = vst [vmem:[#allocation23_spill] sm:$0xff] %v3145_v40  ;;  %v958_v45 = vmul.f32 %v3145_v40, %v3145_v40  ;;  %v1056_v40 = vmul.f32 96.0, %v1024_v47  ;;  %v1043_v59 = vmul.f32 %v2927_v60, %v2927_v60  ;;  %v1073_v50 = vmul.f32 96.0, %v1041_v54 }
  0xe5   :  { %989 = vadd.xlane.f32.xlu1 %v942_v10  ;;  %1019 = vadd.xlane.f32.xlu0 %v957_v43  ;;  %v1025_v10 = vmul.f32 %v2873_v9, %v2873_v9  ;;  %v1026_v43 = vmul.f32 %v2877_v52, %v2877_v52  ;;  %v1072_v9 = vmul.f32 96.0, %v1040_v44  ;;  %v1074_v35 = vmul.f32 96.0, %v1042_v61 }
  0xe6   :  { %v1059_v7 = vmul.f32 96.0, %v1027_v55  ;;  %v1029_v47 = vmul.f32 %v2945_v22, %v2945_v22  ;;  %v1030_v60 = vmul.f32 %v2949_v53, %v2949_v53  ;;  %v3183_v0 = vmul.f32 96.0, %v1043_v59 }
  0xe7   :  { %v1057_v52 = vmul.f32 96.0, %v1025_v10  ;;  %v1031_v53 = vmul.f32 %v2987_v36, %v2987_v36  ;;  %v1032_v55 = vmul.f32 %v2991_v4, %v2991_v4  ;;  %v1048_v36 = vmul.f32 %v3012_v6, %v3012_v6 }
  0xe8   :  { %v3191_v61 = vmul.f32 96.0, %v1029_v47  ;;  %v3199_v59 = vmul.f32 96.0, %v1030_v60  ;;  %v1033_v60 = vmul.f32 %v3029_v17, %v3029_v17 }
  0xe9   :  { %1021 = vadd.xlane.f32.xlu1 %v958_v45 }
 0x136   :  { %v960_v34 = vpop.xlane.xlu0 %959 }
 0x137   :  { %v1087_v45 = vsub.f32 %v960_v34, %v1055_v39  ;;  %v1058_v34 = vmul.f32 96.0, %v1026_v43 }
 0x139   :  { %v1119_v41 = vmul.f32 0.03125, %v1087_v45  ;;  %v3177_v45 = vmul.f32 96.0, %v1028_v63  ;;  %v1047_v63 = vmul.f32 %v3008_v1, %v3008_v1  ;;  %v3207_v1 = vmul.f32 96.0, %v1031_v53 }
 0x13a   :  { %v962_v31 = vpop.xlane.xlu1 %961  ;;  %v992_v46 = vpop.xlane.xlu0 %991 }
 0x13b   :  { %v1151_v39 = vadd.f32 1e-05, %v1119_v41  ;;  %v1088_v24 = vsub.f32 %v962_v31, %v1056_v40  ;;  %v1103_v3 = vsub.f32 %v992_v46, %v1071_v42  ;;  %v3185_v31 = vmul.f32 96.0, %v1044_v62 }
 0x13c   :  { %v1045_v46 = vmul.f32 %v2966_v51, %v2966_v51  ;;  %v1046_v42 = vmul.f32 %v2970_v48, %v2970_v48 }
 0x13d   :  { %2355 = vrsqrt.f32 %v1151_v39  ;;  %v1120_v32 = vmul.f32 0.03125, %v1088_v24  ;;  %v1135_v44 = vmul.f32 0.03125, %v1103_v3 }
 0x13e   :  { %v994_v10 = vpop.xlane.xlu1 %993  ;;  %v964_v43 = vpop.xlane.xlu0 %963  ;;  %v3203_v62 = vmul.f32 96.0, %v1046_v42 }
 0x13f   :  { %v1152_v40 = vadd.f32 1e-05, %v1120_v32  ;;  %v1167_v22 = vadd.f32 1e-05, %v1135_v44  ;;  %v1104_v54 = vsub.f32 %v994_v10, %v1072_v9  ;;  %v1089_v24 = vsub.f32 %v964_v43, %v1057_v52 }
 0x140   :  { %v3201_v52 = vmul.f32 96.0, %v1045_v46  ;;  %v3209_v32 = vmul.f32 96.0, %v1032_v55  ;;  %v3211_v44 = vmul.f32 96.0, %v1047_v63  ;;  %v1034_v46 = vmul.f32 %v3033_v16, %v3033_v16 }
 0x141   :  { %2357 = vrsqrt.f32 %v1152_v40  ;;  %v1136_v51 = vmul.f32 0.03125, %v1104_v54  ;;  %v1121_v41 = vmul.f32 0.03125, %v1089_v24  ;;  %v1050_v40 = vmul.f32 %v3054_v29, %v3054_v29  ;;  %v3233_v29 = vld [vmem:[%s4094_s2] ss:$0 sm:$0xff] }
 0x142   :  { %2359 = vrsqrt.f32 %v1167_v22  ;;  %v966_v48 = vpop.xlane.xlu1 %965  ;;  %v996_v9 = vpop.xlane.xlu0 %995  ;;  %v3224_v63 = vmul.f32 96.0, %v1033_v60  ;;  %v1035_v16 = vmul.f32 %v3071_v26, %v3071_v26  ;;  %v1051_v26 = vmul.f32 %v3092_v30, %v3092_v30  ;;  %v3254_v30 = vld [vmem:[%s4095_s3] ss:$0 sm:$0xff] }
 0x143   :  { %v1168_v39 = vadd.f32 1e-05, %v1136_v51  ;;  %v1153_v4 = vadd.f32 1e-05, %v1121_v41  ;;  %v1090_v3 = vsub.f32 %v966_v48, %v1058_v34  ;;  %v1105_v47 = vsub.f32 %v996_v9, %v1073_v50 }
 0x144   :  { %v3217_v34 = vmul.f32 96.0, %v1048_v36  ;;  %v1049_v50 = vmul.f32 %v3050_v20, %v3050_v20  ;;  %v1036_v51 = vmul.f32 %v3075_v19, %v3075_v19  ;;  %v3239_v9 = vmul.f32 96.0, %v1050_v40 }
 0x145   :  { %2361 = vrsqrt.f32 %v1168_v39  ;;  %v1122_v10 = vmul.f32 0.03125, %v1090_v3  ;;  %v1137_v43 = vmul.f32 0.03125, %v1105_v47  ;;  %v3258_v40 = vmul.f32 96.0, %v1051_v26 }
 0x146   :  { %2363 = vrsqrt.f32 %v1153_v4  ;;  %v998_v6 = vpop.xlane.xlu1 %997  ;;  %v968_v42 = vpop.xlane.xlu0 %967  ;;  %v3237_v48 = vmul.f32 96.0, %v1049_v50 }
 0x147   :  { %v2356_v22 = vpop.eup %2355  ;;  %v1154_v54 = vadd.f32 1e-05, %v1122_v10  ;;  %v1169_v17 = vadd.f32 1e-05, %v1137_v43  ;;  %v1106_v24 = vsub.f32 %v998_v6, %v1074_v35  ;;  %v1091_v53 = vsub.f32 %v968_v42, %v1059_v7 }
 0x148   :  { %v1215_v55 = vmul.f32 %v2356_v22, %v2848_v57  ;;  %v3235_v35 = vmul.f32 96.0, %v1034_v46  ;;  %v3247_v43 = vmul.f32 96.0, %v1035_v16  ;;  %v3249_v46 = vmul.f32 96.0, %v1036_v51 }
 0x149   :  { %2365 = vrsqrt.f32 %v1154_v54  ;;  %v1138_v20 = vmul.f32 0.03125, %v1106_v24  ;;  %v1123_v41 = vmul.f32 0.03125, %v1091_v53  ;;  %v1052_v22 = vmul.f32 %v3096_v25, %v3096_v25 }
 0x14a   :  { %2367 = vrsqrt.f32 %v1169_v17  ;;  %v970_v57 = vpop.xlane.xlu1 %969  ;;  %v1000_v7 = vpop.xlane.xlu0 %999  ;;  %v1254_v10 = vmul.f32 %v3233_v29, %v1215_v55 }
 0x14b   :  { %v2358_v19 = vpop.eup %2357  ;;  %v1170_v36 = vadd.f32 1e-05, %v1138_v20  ;;  %v1155_v39 = vadd.f32 1e-05, %v1123_v41  ;;  %v1092_v4 = vsub.f32 %v970_v57, %v3177_v45  ;;  %v1107_v3 = vsub.f32 %v1000_v7, %v3183_v0 }
 0x14c   :  { %v2360_v47 = vpop.eup %2359  ;;  %v1216_v60 = vmul.f32 %v2358_v19, %v2866_v14 }
 0x14d   :  { %2369 = vrsqrt.f32 %v1170_v36  ;;  %v1124_v6 = vmul.f32 0.03125, %v1092_v4  ;;  %v1139_v42 = vmul.f32 0.03125, %v1107_v3  ;;  %v1231_v45 = vmul.f32 %v2360_v47, %v2853_v58 }
 0x14e   :  { %2371 = vrsqrt.f32 %v1155_v39  ;;  %v1002_v0 = vpop.xlane.xlu1 %1001  ;;  %v972_v50 = vpop.xlane.xlu0 %971  ;;  %v1255_v14 = vmul.f32 %v3233_v29, %v1216_v60  ;;  %v1293_v58 = vadd.f32 %v3254_v30, %v1254_v10  ;;  %v3270_v36 = vmul.f32 96.0, %v1052_v22 }
 0x14f   :  { %v2362_v54 = vpop.eup %2361  ;;  %v1156_v17 = vadd.f32 1e-05, %v1124_v6  ;;  %v1171_v24 = vadd.f32 1e-05, %v1139_v42  ;;  %v1108_v53 = vsub.f32 %v1002_v0, %v3185_v31  ;;  %v1093_v55 = vsub.f32 %v972_v50, %v3191_v61 }
 0x150   :  { %v2364_v16 = vpop.eup %2363  ;;  %v1294_v51 = vadd.f32 %v3254_v30, %v1255_v14  ;;  %v1232_v20 = vmul.f32 %v2362_v54, %v2871_v15  ;;  %v1270_v41 = vmul.f32 %v3233_v29, %v1231_v45  ;;  %v1037_v54 = vmul.f32 %v3113_v33, %v3113_v33 }
 0x151   :  { %2373 = vrsqrt.f32 %v1156_v17  ;;  %v1140_v57 = vmul.f32 0.03125, %v1108_v53  ;;  %v1125_v7 = vmul.f32 0.03125, %v1093_v55  ;;  %v1217_v25 = vmul.f32 %v2364_v16, %v2884_v8 }
 0x152   :  { %2375 = vrsqrt.f32 %v1171_v24  ;;  %v974_v26 = vpop.xlane.xlu1 %973  ;;  %v1004_v19 = vpop.xlane.xlu0 %1003  ;;  %v1325_v31 = vpack.c.bf16 %v1294_v51, %v1293_v58  ;;  %v1271_v61 = vmul.f32 %v3233_v29, %v1232_v20  ;;  %v1309_v10 = vadd.f32 %v3254_v30, %v1270_v41 }
 0x153   :  { %v2366_v39 = vpop.eup %2365  ;;  %v1172_v4 = vadd.f32 1e-05, %v1140_v57  ;;  %v1157_v3 = vadd.f32 1e-05, %v1125_v7  ;;  %v1094_v15 = vsub.f32 %v974_v26, %v3199_v59  ;;  %v1109_v47 = vsub.f32 %v1004_v19, %v3201_v52 }
 0x154   :  { %v2368_v60 = vpop.eup %2367  ;;  %2298 = vmatprep.mubr.bf16.mxu0 %v1325_v31  ;;  %v1310_v8 = vadd.f32 %v3254_v30, %v1271_v61  ;;  %v1218_v6 = vmul.f32 %v2366_v39, %v2889_v21  ;;  %v1256_v42 = vmul.f32 %v3233_v29, %v1217_v25  ;;  %v1038_v26 = vmul.f32 %v3117_v28, %v3117_v28 }
 0x155   :  { %2377 = vrsqrt.f32 %v1172_v4  ;;  %v1126_v45 = vmul.f32 0.03125, %v1094_v15  ;;  %v1141_v0 = vmul.f32 0.03125, %v1109_v47  ;;  %v1233_v50 = vmul.f32 %v2368_v60, %v2902_v23 }
 0x156   :  { %2379 = vrsqrt.f32 %v1157_v3  ;;  %v1006_v14 = vpop.xlane.xlu1 %1005  ;;  %v976_v59 = vpop.xlane.xlu0 %975  ;;  %v1333_v22 = vpack.c.bf16 %v1310_v8, %v1309_v10  ;;  %v1257_v52 = vmul.f32 %v3233_v29, %v1218_v6  ;;  %v1295_v23 = vadd.f32 %v3254_v30, %v1256_v42 }
 0x157   :  { %v2370_v17 = vpop.eup %2369  ;;  %v1158_v24 = vadd.f32 1e-05, %v1126_v45  ;;  %v1173_v53 = vadd.f32 1e-05, %v1141_v0  ;;  %v1110_v21 = vsub.f32 %v1006_v14, %v3203_v62  ;;  %v1095_v55 = vsub.f32 %v976_v59, %v3207_v1 }
 0x158   :  { %v2372_v16 = vpop.eup %2371  ;;  %2314 = vmatprep.mubr.bf16.mxu1 %v1333_v22  ;;  %v1296_v58 = vadd.f32 %v3254_v30, %v1257_v52  ;;  %v1234_v51 = vmul.f32 %v2370_v17, %v2907_v37  ;;  %v1272_v20 = vmul.f32 %v3233_v29, %v1233_v50  ;;  %v3300_v42 = vmul.f32 96.0, %v1037_v54 }
 0x159   :  { %2381 = vrsqrt.f32 %v1158_v24  ;;  %v1142_v41 = vmul.f32 0.03125, %v1110_v21  ;;  %v1127_v33 = vmul.f32 0.03125, %v1095_v55  ;;  %v1219_v57 = vmul.f32 %v2372_v16, %v2920_v38 }
 0x15a   :  { %2383 = vrsqrt.f32 %v1173_v53  ;;  %v978_v7 = vpop.xlane.xlu1 %977  ;;  %v1008_v62 = vpop.xlane.xlu0 %1007  ;;  %v1326_v25 = vpack.c.bf16 %v1296_v58, %v1295_v23  ;;  %v1273_v1 = vmul.f32 %v3233_v29, %v1234_v51  ;;  %v1311_v38 = vadd.f32 %v3254_v30, %v1272_v20 }
 0x15b   :  { %v2374_v19 = vpop.eup %2373  ;;  %v1174_v31 = vadd.f32 1e-05, %v1142_v41  ;;  %v1159_v61 = vadd.f32 1e-05, %v1127_v33  ;;  %v1096_v37 = vsub.f32 %v978_v7, %v3209_v32  ;;  %v1111_v39 = vsub.f32 %v1008_v62, %v3211_v44 }
 0x15c   :  { %v2376_v4 = vpop.eup %2375  ;;  %2299 = vmatmul.mubr.bf16.vlgmr.msra.gmra.mrb[0].mxu0 %v1326_v25  ;;  %v1312_v3 = vadd.f32 %v3254_v30, %v1273_v1  ;;  %v1220_v15 = vmul.f32 %v2374_v19, %v2925_v49  ;;  %v1258_v47 = vmul.f32 %v3233_v29, %v1219_v57  ;;  %v3310_v16 = vmul.f32 96.0, %v1038_v26 }
 0x15d   :  { %2385 = vrsqrt.f32 %v1174_v31  ;;  %v1128_v60 = vmul.f32 0.03125, %v1096_v37  ;;  %v1143_v28 = vmul.f32 0.03125, %v1111_v39  ;;  %v1235_v10 = vmul.f32 %v2376_v4, %v2938_v56 }
 0x15e   :  { %2387 = vrsqrt.f32 %v1159_v61  ;;  %v1010_v8 = vpop.xlane.xlu1 %1009  ;;  %v980_v32 = vpop.xlane.xlu0 %979  ;;  %v1334_v6 = vpack.c.bf16 %v1312_v3, %v1311_v38  ;;  %v1259_v44 = vmul.f32 %v3233_v29, %v1220_v15  ;;  %v1297_v22 = vadd.f32 %v3254_v30, %v1258_v47 }
 0x15f   :  { %v2378_v45 = vpop.eup %2377  ;;  %v1160_v0 = vadd.f32 1e-05, %v1128_v60  ;;  %v1175_v50 = vadd.f32 1e-05, %v1143_v28  ;;  %v1112_v49 = vsub.f32 %v1010_v8, %v3217_v34  ;;  %v1097_v14 = vsub.f32 %v980_v32, %v3224_v63 }
 0x160   :  { %v2380_v59 = vpop.eup %2379  ;;  %2315 = vmatmul.mubr.bf16.vlgmr.msra.gmra.mrb[0].mxu1 %v1334_v6  ;;  %v1298_v56 = vadd.f32 %v3254_v30, %v1259_v44  ;;  %v1236_v52 = vmul.f32 %v2378_v45, %v2943_v5  ;;  %v1274_v17 = vmul.f32 %v3233_v29, %v1235_v10  ;;  %v4160_v10 = vld [vmem:[#allocation21_spill] sm:$0xff] }
 0x161   :  { %2389 = vrsqrt.f32 %v1160_v0  ;;  %v1144_v54 = vmul.f32 0.03125, %v1112_v49  ;;  %v1129_v24 = vmul.f32 0.03125, %v1097_v14  ;;  %v1221_v53 = vmul.f32 %v2380_v59, %v2959_v11  ;;  %v4161_v59 = vld [vmem:[#allocation8_spill] sm:$0xff] }
 0x162   :  { %2391 = vrsqrt.f32 %v1175_v50  ;;  %v982_v21 = vpop.xlane.xlu1 %981  ;;  %v1012_v34 = vpop.xlane.xlu0 %1011  ;;  %v1327_v55 = vpack.c.bf16 %v1298_v56, %v1297_v22  ;;  %v1275_v63 = vmul.f32 %v3233_v29, %v1236_v52  ;;  %v1313_v33 = vadd.f32 %v3254_v30, %v1274_v17 }
 0x163   :  { %v2382_v23 = vpop.eup %2381  ;;  %v1176_v58 = vadd.f32 1e-05, %v1144_v54  ;;  %v1161_v51 = vadd.f32 1e-05, %v1129_v24  ;;  %v1098_v5 = vsub.f32 %v982_v21, %v3235_v35  ;;  %v1113_v20 = vsub.f32 %v1012_v34, %v3237_v48  ;;  %v4162_v54 = vld [vmem:[#allocation9_spill] sm:$0xff] }
 0x164   :  { %v2384_v41 = vpop.eup %2383  ;;  %2302 = vmatprep.mubr.bf16.mxu0 %v1327_v55  ;;  %v1314_v11 = vadd.f32 %v3254_v30, %v1275_v63  ;;  %v1222_v57 = vmul.f32 %v2382_v23, %v2964_v12  ;;  %v1260_v7 = vmul.f32 %v3233_v29, %v1221_v53  ;;  %v1053_v35 = vmul.f32 %v3131_v27, %v3131_v27 }
 0x165   :  { %2393 = vrsqrt.f32 %v1176_v58  ;;  %v1130_v62 = vmul.f32 0.03125, %v1098_v5  ;;  %v1145_v25 = vmul.f32 0.03125, %v1113_v20  ;;  %v1237_v1 = vmul.f32 %v2384_v41, %v2980_v13 }
 0x166   :  { %2395 = vrsqrt.f32 %v1161_v51  ;;  %v1014_v48 = vpop.xlane.xlu1 %1013  ;;  %v984_v26 = vpop.xlane.xlu0 %983  ;;  %v1335_v19 = vpack.c.bf16 %v1314_v11, %v1313_v33  ;;  %v1261_v31 = vmul.f32 %v3233_v29, %v1222_v57  ;;  %v1299_v13 = vadd.f32 %v3254_v30, %v1260_v7  ;;  %v4163_v33 = vld [vmem:[#allocation10_spill] sm:$0xff] }
 0x167   :  { %v2386_v61 = vpop.eup %2385  ;;  %v1162_v37 = vadd.f32 1e-05, %v1130_v62  ;;  %v1177_v39 = vadd.f32 1e-05, %v1145_v25  ;;  %v1114_v12 = vsub.f32 %v1014_v48, %v3239_v9  ;;  %v1099_v4 = vsub.f32 %v984_v26, %v3247_v43  ;;  %v4164_v25 = vld [vmem:[#allocation11_spill] sm:$0xff] }
 0x168   :  { %v2388_v38 = vpop.eup %2387  ;;  %2318 = vmatprep.mubr.bf16.mxu1 %v1335_v19  ;;  %v1300_v3 = vadd.f32 %v3254_v30, %v1261_v31  ;;  %v1238_v27 = vmul.f32 %v2386_v61, %v2985_v2  ;;  %v1276_v15 = vmul.f32 %v3233_v29, %v1237_v1  ;;  %v1054_v9 = vmul.f32 %v4160_v10, %v4160_v10 }
 0x169   :  { %2397 = vrsqrt.f32 %v1162_v37  ;;  %v1146_v47 = vmul.f32 0.03125, %v1114_v12  ;;  %v1131_v60 = vmul.f32 0.03125, %v1099_v4  ;;  %v1223_v28 = vmul.f32 %v2388_v38, %v3001_v18 }
 0x16a   :  { %2399 = vrsqrt.f32 %v1177_v39  ;;  %v986_v43 = vpop.xlane.xlu1 %985  ;;  %v1016_v8 = vpop.xlane.xlu0 %1015  ;;  %v1328_v32 = vpack.c.bf16 %v1300_v3, %v1299_v13  ;;  %v1277_v6 = vmul.f32 %v3233_v29, %v1238_v27  ;;  %v1315_v18 = vadd.f32 %v3254_v30, %v1276_v15  ;;  %v4165_v13 = vld [vmem:[#allocation12_spill] sm:$0xff] }
 0x16b   :  { %v2390_v44 = vpop.eup %2389  ;;  %v1178_v45 = vadd.f32 1e-05, %v1146_v47  ;;  %v1163_v0 = vadd.f32 1e-05, %v1131_v60  ;;  %v1100_v2 = vsub.f32 %v986_v43, %v3249_v46  ;;  %v1115_v50 = vsub.f32 %v1016_v8, %v3258_v40  ;;  %v4166_v60 = vld [vmem:[#allocation13_spill] sm:$0xff] }
 0x16c   :  { %v2392_v49 = vpop.eup %2391  ;;  %2303 = vmatmul.mubr.bf16.gmra.mrb[4].mxu0 %v1328_v32  ;;  %v1316_v14 = vadd.f32 %v3254_v30, %v1277_v6  ;;  %v1224_v22 = vmul.f32 %v2390_v44, %v4161_v59  ;;  %v1262_v56 = vmul.f32 %v3233_v29, %v1223_v28  ;;  %v1085_v40 = vmul.f32 96.0, %v1053_v35 }
 0x16d   :  { %2401 = vrsqrt.f32 %v1178_v45  ;;  %v1132_v52 = vmul.f32 0.03125, %v1100_v2  ;;  %v1147_v17 = vmul.f32 0.03125, %v1115_v50  ;;  %v1239_v24 = vmul.f32 %v2392_v49, %v4162_v54  ;;  %v4167_v2 = vld [vmem:[#allocation14_spill] sm:$0xff] }
 0x16e   :  { %2403 = vrsqrt.f32 %v1163_v0  ;;  %v1018_v53 = vpop.xlane.xlu1 %1017  ;;  %v988_v46 = vpop.xlane.xlu0 %987  ;;  %v1336_v21 = vpack.c.bf16 %v1316_v14, %v1315_v18  ;;  %v1263_v34 = vmul.f32 %v3233_v29, %v1224_v22  ;;  %v1301_v20 = vadd.f32 %v3254_v30, %v1262_v56  ;;  %v4168_v14 = vld [vmem:[#allocation15_spill] sm:$0xff] }
 0x16f   :  { %v2394_v55 = vpop.eup %2393  ;;  %v1164_v63 = vadd.f32 1e-05, %v1132_v52  ;;  %v1179_v23 = vadd.f32 1e-05, %v1147_v17  ;;  %v1116_v58 = vsub.f32 %v1018_v53, %v3270_v36  ;;  %v1101_v51 = vsub.f32 %v988_v46, %v3300_v42  ;;  %v4169_v46 = vld [vmem:[#allocation16_spill] sm:$0xff] }
 0x170   :  { %v2396_v5 = vpop.eup %2395  ;;  %2319 = vmatmul.mubr.bf16.gmra.mrb[4].mxu1 %v1336_v21  ;;  %v1302_v41 = vadd.f32 %v3254_v30, %v1263_v34  ;;  %v1240_v11 = vmul.f32 %v2394_v55, %v4163_v33  ;;  %v1278_v57 = vmul.f32 %v3233_v29, %v1239_v24  ;;  %v1086_v42 = vmul.f32 96.0, %v1054_v9  ;;  %v4170_v34 = vld [vmem:[#allocation17_spill] sm:$0xff] }
 0x171   :  { %2405 = vrsqrt.f32 %v1164_v63  ;;  %v1148_v7 = vmul.f32 0.03125, %v1116_v58  ;;  %v1133_v62 = vmul.f32 0.03125, %v1101_v51  ;;  %v1225_v1 = vmul.f32 %v2396_v5, %v4164_v25 }
 0x172   :  { %2407 = vrsqrt.f32 %v1179_v23  ;;  %v990_v35 = vpop.xlane.xlu1 %989  ;;  %v1020_v36 = vpop.xlane.xlu0 %1019  ;;  %v1329_v48 = vpack.c.bf16 %v1302_v41, %v1301_v20  ;;  %v1279_v26 = vmul.f32 %v3233_v29, %v1240_v11  ;;  %v1317_v4 = vadd.f32 %v3254_v30, %v1278_v57  ;;  %v4171_v41 = vld [vmem:[#allocation18_spill] sm:$0xff]  ;;  %v4172_v57 = vld [vmem:[#allocation19_spill] sm:$0xff] }
 0x173   :  { %v2398_v19 = vpop.eup %2397  ;;  %v1180_v31 = vadd.f32 1e-05, %v1148_v7  ;;  %v1165_v61 = vadd.f32 1e-05, %v1133_v62  ;;  %v1102_v37 = vsub.f32 %v990_v35, %v3310_v16  ;;  %v1117_v39 = vsub.f32 %v1020_v36, %v1085_v40 }
 0x174   :  { %v2400_v12 = vpop.eup %2399  ;;  %2306 = vmatprep.mubr.bf16.mxu0 %v1329_v48  ;;  %v1318_v38 = vadd.f32 %v3254_v30, %v1279_v26  ;;  %v1226_v3 = vmul.f32 %v2398_v19, %v4165_v13  ;;  %v1264_v27 = vmul.f32 %v3233_v29, %v1225_v1  ;;  %v4175_v13 = vld [vmem:[#allocation23_spill] sm:$0xff] }
 0x175   :  { %2409 = vrsqrt.f32 %v1180_v31  ;;  %v1134_v15 = vmul.f32 0.03125, %v1102_v37  ;;  %v1149_v47 = vmul.f32 0.03125, %v1117_v39  ;;  %v1241_v28 = vmul.f32 %v2400_v12, %v4166_v60  ;;  %v4174_v31 = vld [vmem:[#allocation22_spill] sm:$0xff] }
 0x176   :  { %2411 = vrsqrt.f32 %v1165_v61  ;;  %v1022_v10 = vpop.xlane.xlu1 %1021  ;;  %v1337_v9 = vpack.c.bf16 %v1318_v38, %v1317_v4  ;;  %v1265_v16 = vmul.f32 %v3233_v29, %v1226_v3  ;;  %v1303_v45 = vadd.f32 %v3254_v30, %v1264_v27 }
 0x177   :  { %v2402_v43 = vpop.eup %2401  ;;  %v1166_v8 = vadd.f32 1e-05, %v1134_v15  ;;  %v1181_v32 = vadd.f32 1e-05, %v1149_v47  ;;  %v1118_v6 = vsub.f32 %v1022_v10, %v1086_v42  ;;  %v1280_v49 = vmul.f32 %v3233_v29, %v1241_v28  ;;  %v4173_v42 = vld [vmem:[#allocation20_spill] sm:$0xff] }
 0x178   :  { %v2404_v44 = vpop.eup %2403  ;;  %2322 = vmatprep.mubr.bf16.mxu1 %v1337_v9  ;;  %v1304_v0 = vadd.f32 %v3254_v30, %v1265_v16  ;;  %v1242_v50 = vmul.f32 %v2402_v43, %v4167_v2  ;;  %v3389_v9 = vld [vmem:[%s4093_s1] ss:$0 sm:$0xff] }
 0x179   :  { %2413 = vrsqrt.f32 %v1166_v8  ;;  %v1150_v18 = vmul.f32 0.03125, %v1118_v6  ;;  %v1227_v59 = vmul.f32 %v2404_v44, %v4168_v14  ;;  %v1319_v24 = vadd.f32 %v3254_v30, %v1280_v49 }
 0x17a   :  { %2415 = vrsqrt.f32 %v1181_v32  ;;  %v1330_v22 = vpack.c.bf16 %v1304_v0, %v1303_v45  ;;  %v1281_v56 = vmul.f32 %v3233_v29, %v1242_v50 }
 0x17b   :  { %v2406_v52 = vpop.eup %2405  ;;  %v1182_v17 = vadd.f32 1e-05, %v1150_v18  ;;  %v1266_v40 = vmul.f32 %v3233_v29, %v1227_v59 }
 0x17c   :  { %v2408_v54 = vpop.eup %2407  ;;  %2307 = vmatmul.mubr.bf16.gmra.mrb[8].mxu0 %v1330_v22  ;;  %v1320_v53 = vadd.f32 %v3254_v30, %v1281_v56  ;;  %v1228_v21 = vmul.f32 %v2406_v52, %v4169_v46 }
 0x17d   :  { %2417 = vrsqrt.f32 %v1182_v17  ;;  %v1243_v55 = vmul.f32 %v2408_v54, %v4170_v34  ;;  %v1305_v5 = vadd.f32 %v3254_v30, %v1266_v40 }
 0x17e   :  { %v1338_v63 = vpack.c.bf16 %v1320_v53, %v1319_v24  ;;  %v1267_v23 = vmul.f32 %v3233_v29, %v1228_v21 }
 0x17f   :  { %v2410_v58 = vpop.eup %2409  ;;  %v1282_v11 = vmul.f32 %v3233_v29, %v1243_v55 }
 0x180   :  { %v2412_v51 = vpop.eup %2411  ;;  %2323 = vmatmul.mubr.bf16.gmra.mrb[8].mxu1 %v1338_v63  ;;  %v1306_v20 = vadd.f32 %v3254_v30, %v1267_v23  ;;  %v1244_v33 = vmul.f32 %v2410_v58, %v4171_v41 }
 0x181   :  { %v1229_v7 = vmul.f32 %v2412_v51, %v4172_v57  ;;  %v1321_v36 = vadd.f32 %v3254_v30, %v1282_v11 }
 0x182   :  { %v1331_v62 = vpack.c.bf16 %v1306_v20, %v1305_v5  ;;  %v1283_v25 = vmul.f32 %v3233_v29, %v1244_v33 }
 0x183   :  { %v2414_v1 = vpop.eup %2413  ;;  %v1268_v19 = vmul.f32 %v3233_v29, %v1229_v7 }
 0x184   :  { %v2416_v35 = vpop.eup %2415  ;;  %2310 = vmatprep.mubr.bf16.mxu0 %v1331_v62  ;;  %v1322_v48 = vadd.f32 %v3254_v30, %v1283_v25  ;;  %v1230_v26 = vmul.f32 %v2414_v1, %v4173_v42 }
 0x185   :  { %v1245_v61 = vmul.f32 %v2416_v35, %v4174_v31  ;;  %v1307_v4 = vadd.f32 %v3254_v30, %v1268_v19 }
 0x186   :  { %v1339_v37 = vpack.c.bf16 %v1322_v48, %v1321_v36  ;;  %v1269_v39 = vmul.f32 %v3233_v29, %v1230_v26 }
 0x187   :  { %v2418_v12 = vpop.eup %2417  ;;  %v1284_v27 = vmul.f32 %v3233_v29, %v1245_v61 }
 0x188   :  { %2326 = vmatprep.mubr.bf16.mxu1 %v1339_v37  ;;  %v1308_v38 = vadd.f32 %v3254_v30, %v1269_v39  ;;  %v1246_v3 = vmul.f32 %v2418_v12, %v4175_v13 }
 0x189   :  { %v1323_v60 = vadd.f32 %v3254_v30, %v1284_v27 }
 0x18a   :  { %v1332_v15 = vpack.c.bf16 %v1308_v38, %v1307_v4  ;;  %v1285_v47 = vmul.f32 %v3233_v29, %v1246_v3 }
 0x18c   :  { %2311 = vmatmul.mubr.bf16.gmra.mrb[12].mxu0 %v1332_v15  ;;  %v1324_v28 = vadd.f32 %v3254_v30, %v1285_v47 }
 0x18e   :  { %v1340_v10 = vpack.c.bf16 %v1324_v28, %v1323_v60 }
 0x190   :  { %2327 = vmatmul.mubr.bf16.gmra.mrb[12].mxu1 %v1340_v10 }
 0x22f   :  { %v2300_v16 = vpop.f32.mrb[0].mxu0 }
 0x230   :  { %v3392_v43 = vadd.f32 %v2300_v16, %v3389_v9  ;;  %v1446_v8 = vpop.f32.mrb[1].mxu0 }
 0x231   :  { %v2301_v32 = vpop.f32.mrb[2].mxu0  ;;  %v3407_v49 = vadd.f32 %v3389_v9, %v1446_v8 }
 0x232   :  { %v3395_v29 = vadd.f32 %v2301_v32, %v3389_v9  ;;  %1577 = vadd.xlane.f32.xlu0 %v3392_v43  ;;  %v1449_v6 = vpop.f32.mrb[3].mxu0 }
 0x233   :  { %v2316_v30 = vpop.f32.mrb[0].mxu1  ;;  %v3411_v18 = vadd.f32 %v3389_v9, %v1449_v6 }
 0x234   :  { %v3399_v44 = vadd.f32 %v2316_v30, %v3389_v9  ;;  %1579 = vadd.xlane.f32.xlu1 %v3395_v29  ;;  %v1510_v45 = vpop.f32.mrb[1].mxu1 }
 0x235   :  { %v2317_v0 = vpop.f32.mrb[2].mxu1  ;;  %v3415_v14 = vadd.f32 %v3389_v9, %v1510_v45 }
 0x236   :  { %v3403_v2 = vadd.f32 %v2317_v0, %v3389_v9  ;;  %1609 = vadd.xlane.f32.xlu0 %v3399_v44  ;;  %v1513_v50 = vpop.f32.mrb[3].mxu1 }
 0x237   :  { %v3419_v59 = vadd.f32 %v3389_v9, %v1513_v50 }
 0x238   :  { %1611 = vadd.xlane.f32.xlu1 %v3403_v2 }
 0x23a   :  { %1573 = vadd.xlane.f32.xlu0 %v3407_v49 }
 0x23c   :  { %1575 = vadd.xlane.f32.xlu1 %v3411_v18 }
 0x23e   :  { %1605 = vadd.xlane.f32.xlu0 %v3415_v14 }
 0x23f   :  { %v2304_v22 = vpop.f32.mrb[4].mxu0 }
 0x240   :  { %v3423_v56 = vadd.f32 %v2304_v22, %v3389_v9  ;;  %1607 = vadd.xlane.f32.xlu1 %v3419_v59  ;;  %v1462_v52 = vpop.f32.mrb[5].mxu0 }
 0x241   :  { %v2305_v17 = vpop.f32.mrb[6].mxu0  ;;  %v3439_v63 = vadd.f32 %v3389_v9, %v1462_v52 }
 0x242   :  { %v3427_v54 = vadd.f32 %v2305_v17, %v3389_v9  ;;  %1585 = vadd.xlane.f32.xlu0 %v3423_v56  ;;  %v1465_v24 = vpop.f32.mrb[7].mxu0 }
 0x243   :  { %v2320_v53 = vpop.f32.mrb[4].mxu1  ;;  %v3443_v23 = vadd.f32 %v3389_v9, %v1465_v24 }
 0x244   :  { %v3431_v46 = vadd.f32 %v2320_v53, %v3389_v9  ;;  %1587 = vadd.xlane.f32.xlu1 %v3427_v54  ;;  %v1526_v21 = vpop.f32.mrb[5].mxu1 }
 0x245   :  { %v2321_v40 = vpop.f32.mrb[6].mxu1  ;;  %v3447_v58 = vadd.f32 %v3389_v9, %v1526_v21 }
 0x246   :  { %v3435_v34 = vadd.f32 %v2321_v40, %v3389_v9  ;;  %1617 = vadd.xlane.f32.xlu0 %v3431_v46  ;;  %v1529_v55 = vpop.f32.mrb[7].mxu1 }
 0x247   :  { %v3451_v51 = vadd.f32 %v3389_v9, %v1529_v55 }
 0x248   :  { %1619 = vadd.xlane.f32.xlu1 %v3435_v34 }
 0x24a   :  { %1581 = vadd.xlane.f32.xlu0 %v3439_v63 }
 0x24c   :  { %1583 = vadd.xlane.f32.xlu1 %v3443_v23 }
 0x24e   :  { %1613 = vadd.xlane.f32.xlu0 %v3447_v58 }
 0x24f   :  { %v2308_v5 = vpop.f32.mrb[8].mxu0 }
 0x250   :  { %v3455_v20 = vadd.f32 %v2308_v5, %v3389_v9  ;;  %1615 = vadd.xlane.f32.xlu1 %v3451_v51  ;;  %v1478_v41 = vpop.f32.mrb[9].mxu0 }
 0x251   :  { %v2309_v33 = vpop.f32.mrb[10].mxu0  ;;  %v3471_v48 = vadd.f32 %v3389_v9, %v1478_v41 }
 0x252   :  { %v3459_v11 = vadd.f32 %v2309_v33, %v3389_v9  ;;  %1593 = vadd.xlane.f32.xlu0 %v3455_v20  ;;  %v1481_v57 = vpop.f32.mrb[11].mxu0 }
 0x253   :  { %v2324_v7 = vpop.f32.mrb[8].mxu1  ;;  %v3475_v42 = vadd.f32 %v3389_v9, %v1481_v57 }
 0x254   :  { %v3463_v62 = vadd.f32 %v2324_v7, %v3389_v9  ;;  %1595 = vadd.xlane.f32.xlu1 %v3459_v11  ;;  %v1542_v25 = vpop.f32.mrb[9].mxu1 }
 0x255   :  { %v2325_v1 = vpop.f32.mrb[10].mxu1  ;;  %v3479_v26 = vadd.f32 %v3389_v9, %v1542_v25 }
 0x256   :  { %v3467_v35 = vadd.f32 %v2325_v1, %v3389_v9  ;;  %1625 = vadd.xlane.f32.xlu0 %v3463_v62  ;;  %v1545_v36 = vpop.f32.mrb[11].mxu1 }
 0x257   :  { %v3483_v19 = vadd.f32 %v3389_v9, %v1545_v36 }
 0x258   :  { %1627 = vadd.xlane.f32.xlu1 %v3467_v35 }
 0x25a   :  { %1589 = vadd.xlane.f32.xlu0 %v3471_v48 }
 0x25c   :  { %1591 = vadd.xlane.f32.xlu1 %v3475_v42 }
 0x25e   :  { %1621 = vadd.xlane.f32.xlu0 %v3479_v26 }
 0x25f   :  { %v2312_v31 = vpop.f32.mrb[12].mxu0 }
 0x260   :  { %v3487_v61 = vadd.f32 %v2312_v31, %v3389_v9  ;;  %1623 = vadd.xlane.f32.xlu1 %v3483_v19  ;;  %v1494_v37 = vpop.f32.mrb[13].mxu0 }
 0x261   :  { %v2313_v39 = vpop.f32.mrb[14].mxu0  ;;  %v3495_v13 = vadd.f32 %v3389_v9, %v1494_v37 }
 0x262   :  { %v3491_v12 = vadd.f32 %v2313_v39, %v3389_v9  ;;  %1601 = vadd.xlane.f32.xlu0 %v3487_v61  ;;  %v1497_v4 = vpop.f32.mrb[15].mxu0 }
 0x263   :  { %v2328_v38 = vpop.f32.mrb[12].mxu1  ;;  %v3499_v15 = vadd.f32 %v3389_v9, %v1497_v4 }
 0x264   :  { %1603 = vadd.xlane.f32.xlu1 %v3491_v12  ;;  %v1558_v3 = vpop.f32.mrb[13].mxu1  ;;  %v3511_v10 = vadd.f32 %v2328_v38, %v3389_v9 }
 0x265   :  { %v2329_v27 = vpop.f32.mrb[14].mxu1  ;;  %v3503_v60 = vadd.f32 %v3389_v9, %v1558_v3 }
 0x266   :  { %1597 = vadd.xlane.f32.xlu0 %v3495_v13  ;;  %v1561_v47 = vpop.f32.mrb[15].mxu1  ;;  %v3515_v16 = vadd.f32 %v2329_v27, %v3389_v9 }
 0x267   :  { %v3507_v28 = vadd.f32 %v3389_v9, %v1561_v47 }
 0x268   :  { %1599 = vadd.xlane.f32.xlu1 %v3499_v15 }
 0x26a   :  { %1629 = vadd.xlane.f32.xlu0 %v3503_v60 }
 0x26c   :  { %1631 = vadd.xlane.f32.xlu1 %v3507_v28 }
 0x26e   :  { %1633 = vadd.xlane.f32.xlu0 %v3511_v10 }
 0x270   :  { %1635 = vadd.xlane.f32.xlu1 %v3515_v16 }
 0x2bf   :  { %v1578_v8 = vpop.xlane.xlu0 %1577 }
 0x2c0   :  { %v3519_v32 = vmul.f32 0.03125, %v1578_v8 }
 0x2c1   :  { %v1580_v6 = vpop.xlane.xlu1 %1579 }
 0x2c2   :  { %v3523_v30 = vsub.f32 %v3392_v43, %v3519_v32  ;;  %v3525_v45 = vmul.f32 0.03125, %v1580_v6 }
 0x2c3   :  { %v1610_v0 = vpop.xlane.xlu0 %1609 }
 0x2c4   :  { %v3529_v50 = vsub.f32 %v3395_v29, %v3525_v45  ;;  %v3531_v9 = vmul.f32 0.03125, %v1610_v0  ;;  %v1703_v22 = vmul.f32 %v3523_v30, %v3523_v30 }
 0x2c5   :  { %v1612_v52 = vpop.xlane.xlu1 %1611 }
 0x2c6   :  { %v3537_v17 = vsub.f32 %v3399_v44, %v3531_v9  ;;  %v3539_v24 = vmul.f32 0.03125, %v1612_v52  ;;  %1737 = vadd.xlane.f32.xlu0 %v1703_v22  ;;  %v1704_v43 = vmul.f32 %v3529_v50, %v3529_v50 }
 0x2c7   :  { %v1574_v53 = vpop.xlane.xlu0 %1573 }
 0x2c8   :  { %v3545_v29 = vsub.f32 %v3403_v2, %v3539_v24  ;;  %v3547_v21 = vmul.f32 0.03125, %v1574_v53  ;;  %1739 = vadd.xlane.f32.xlu1 %v1704_v43  ;;  %v1719_v40 = vmul.f32 %v3537_v17, %v3537_v17 }
 0x2c9   :  { %v1576_v55 = vpop.xlane.xlu1 %1575 }
 0x2ca   :  { %v3553_v44 = vsub.f32 %v3407_v49, %v3547_v21  ;;  %v3555_v5 = vmul.f32 0.03125, %v1576_v55  ;;  %1769 = vadd.xlane.f32.xlu0 %v1719_v40  ;;  %v1720_v41 = vmul.f32 %v3545_v29, %v3545_v29 }
 0x2cb   :  { %v1606_v33 = vpop.xlane.xlu0 %1605 }
 0x2cc   :  { %v3561_v2 = vsub.f32 %v3411_v18, %v3555_v5  ;;  %v3563_v57 = vmul.f32 0.03125, %v1606_v33  ;;  %1771 = vadd.xlane.f32.xlu1 %v1720_v41  ;;  %v1701_v7 = vmul.f32 %v3553_v44, %v3553_v44 }
 0x2cd   :  { %v1608_v25 = vpop.xlane.xlu1 %1607 }
 0x2ce   :  { %v3569_v49 = vsub.f32 %v3415_v14, %v3563_v57  ;;  %v3571_v1 = vmul.f32 0.03125, %v1608_v25  ;;  %1733 = vadd.xlane.f32.xlu0 %v1701_v7  ;;  %v1702_v36 = vmul.f32 %v3561_v2, %v3561_v2 }
 0x2cf   :  { %v1586_v31 = vpop.xlane.xlu0 %1585 }
 0x2d0   :  { %v3577_v18 = vsub.f32 %v3419_v59, %v3571_v1  ;;  %v3579_v37 = vmul.f32 0.03125, %v1586_v31  ;;  %1735 = vadd.xlane.f32.xlu1 %v1702_v36  ;;  %v1717_v39 = vmul.f32 %v3569_v49, %v3569_v49 }
 0x2d1   :  { %v1588_v4 = vpop.xlane.xlu1 %1587 }
 0x2d2   :  { %v3585_v14 = vsub.f32 %v3423_v56, %v3579_v37  ;;  %v3587_v38 = vmul.f32 0.03125, %v1588_v4  ;;  %1765 = vadd.xlane.f32.xlu0 %v1717_v39  ;;  %v1718_v3 = vmul.f32 %v3577_v18, %v3577_v18 }
 0x2d3   :  { %v1618_v27 = vpop.xlane.xlu0 %1617 }
 0x2d4   :  { %v3593_v59 = vsub.f32 %v3427_v54, %v3587_v38  ;;  %v3595_v47 = vmul.f32 0.03125, %v1618_v27  ;;  %1767 = vadd.xlane.f32.xlu1 %v1718_v3  ;;  %v1707_v8 = vmul.f32 %v3585_v14, %v3585_v14 }
 0x2d5   :  { %v1620_v6 = vpop.xlane.xlu1 %1619 }
 0x2d6   :  { %v3601_v56 = vsub.f32 %v3431_v46, %v3595_v47  ;;  %v3603_v0 = vmul.f32 0.03125, %v1620_v6  ;;  %1745 = vadd.xlane.f32.xlu0 %v1707_v8  ;;  %v1708_v22 = vmul.f32 %v3593_v59, %v3593_v59 }
 0x2d7   :  { %v1582_v52 = vpop.xlane.xlu0 %1581 }
 0x2d8   :  { %v3609_v54 = vsub.f32 %v3435_v34, %v3603_v0  ;;  %v3611_v43 = vmul.f32 0.03125, %v1582_v52  ;;  %1747 = vadd.xlane.f32.xlu1 %v1708_v22  ;;  %v1723_v53 = vmul.f32 %v3601_v56, %v3601_v56 }
 0x2d9   :  { %v1584_v40 = vpop.xlane.xlu1 %1583 }
 0x2da   :  { %v3617_v46 = vsub.f32 %v3439_v63, %v3611_v43  ;;  %v3619_v55 = vmul.f32 0.03125, %v1584_v40  ;;  %1777 = vadd.xlane.f32.xlu0 %v1723_v53  ;;  %v1724_v41 = vmul.f32 %v3609_v54, %v3609_v54 }
 0x2db   :  { %v1614_v33 = vpop.xlane.xlu0 %1613 }
 0x2dc   :  { %v3625_v34 = vsub.f32 %v3443_v23, %v3619_v55  ;;  %v3627_v7 = vmul.f32 0.03125, %v1614_v33  ;;  %1779 = vadd.xlane.f32.xlu1 %v1724_v41  ;;  %v1705_v25 = vmul.f32 %v3617_v46, %v3617_v46 }
 0x2dd   :  { %v1616_v36 = vpop.xlane.xlu1 %1615 }
 0x2de   :  { %v3633_v63 = vsub.f32 %v3447_v58, %v3627_v7  ;;  %v3635_v31 = vmul.f32 0.03125, %v1616_v36  ;;  %1741 = vadd.xlane.f32.xlu0 %v1705_v25  ;;  %v1706_v39 = vmul.f32 %v3625_v34, %v3625_v34 }
 0x2df   :  { %v1594_v4 = vpop.xlane.xlu0 %1593 }
 0x2e0   :  { %v3641_v23 = vsub.f32 %v3451_v51, %v3635_v31  ;;  %v3643_v3 = vmul.f32 0.03125, %v1594_v4  ;;  %1743 = vadd.xlane.f32.xlu1 %v1706_v39  ;;  %v1721_v27 = vmul.f32 %v3633_v63, %v3633_v63 }
 0x2e1   :  { %v1596_v8 = vpop.xlane.xlu1 %1595 }
 0x2e2   :  { %v3649_v58 = vsub.f32 %v3455_v20, %v3643_v3  ;;  %v3651_v6 = vmul.f32 0.03125, %v1596_v8  ;;  %1773 = vadd.xlane.f32.xlu0 %v1721_v27  ;;  %v1722_v22 = vmul.f32 %v3641_v23, %v3641_v23 }
 0x2e3   :  { %v1626_v52 = vpop.xlane.xlu0 %1625 }
 0x2e4   :  { %v3657_v51 = vsub.f32 %v3459_v11, %v3651_v6  ;;  %v3659_v53 = vmul.f32 0.03125, %v1626_v52  ;;  %1775 = vadd.xlane.f32.xlu1 %v1722_v22  ;;  %v1711_v40 = vmul.f32 %v3649_v58, %v3649_v58 }
 0x2e5   :  { %v1628_v41 = vpop.xlane.xlu1 %1627 }
 0x2e6   :  { %v3665_v20 = vsub.f32 %v3463_v62, %v3659_v53  ;;  %v3667_v33 = vmul.f32 0.03125, %v1628_v41  ;;  %1753 = vadd.xlane.f32.xlu0 %v1711_v40  ;;  %v1712_v25 = vmul.f32 %v3657_v51, %v3657_v51 }
 0x2e7   :  { %v1590_v36 = vpop.xlane.xlu0 %1589 }
 0x2e8   :  { %4176 = vst [vmem:[#allocation21_spill] sm:$0xff] %v3665_v20  ;;  %v3673_v11 = vsub.f32 %v3467_v35, %v3667_v33  ;;  %v3675_v39 = vmul.f32 0.03125, %v1590_v36  ;;  %1755 = vadd.xlane.f32.xlu1 %v1712_v25  ;;  %v1727_v4 = vmul.f32 %v3665_v20, %v3665_v20 }
 0x2e9   :  { %v1592_v27 = vpop.xlane.xlu1 %1591 }
 0x2ea   :  { %4177 = vst [vmem:[#allocation8_spill] sm:$0xff] %v3673_v11  ;;  %v3681_v62 = vsub.f32 %v3471_v48, %v3675_v39  ;;  %v3683_v8 = vmul.f32 0.03125, %v1592_v27  ;;  %1785 = vadd.xlane.f32.xlu0 %v1727_v4  ;;  %v1728_v22 = vmul.f32 %v3673_v11, %v3673_v11 }
 0x2eb   :  { %v1622_v52 = vpop.xlane.xlu0 %1621 }
 0x2ec   :  { %4178 = vst [vmem:[#allocation9_spill] sm:$0xff] %v3681_v62  ;;  %v3689_v35 = vsub.f32 %v3475_v42, %v3683_v8  ;;  %v3691_v40 = vmul.f32 0.03125, %v1622_v52  ;;  %1787 = vadd.xlane.f32.xlu1 %v1728_v22  ;;  %v1709_v41 = vmul.f32 %v3681_v62, %v3681_v62 }
 0x2ed   :  { %v1624_v25 = vpop.xlane.xlu1 %1623 }
 0x2ee   :  { %4179 = vst [vmem:[#allocation10_spill] sm:$0xff] %v3689_v35  ;;  %v3697_v48 = vsub.f32 %v3479_v26, %v3691_v40  ;;  %v3699_v36 = vmul.f32 0.03125, %v1624_v25  ;;  %1749 = vadd.xlane.f32.xlu0 %v1709_v41  ;;  %v1710_v4 = vmul.f32 %v3689_v35, %v3689_v35 }
 0x2ef   :  { %v1602_v27 = vpop.xlane.xlu0 %1601 }
 0x2f0   :  { %4180 = vst [vmem:[#allocation11_spill] sm:$0xff] %v3697_v48  ;;  %v3705_v42 = vsub.f32 %v3483_v19, %v3699_v36  ;;  %v3707_v22 = vmul.f32 0.03125, %v1602_v27  ;;  %1751 = vadd.xlane.f32.xlu1 %v1710_v4  ;;  %v1725_v52 = vmul.f32 %v3697_v48, %v3697_v48 }
 0x2f1   :  { %v1604_v62 = vpop.xlane.xlu1 %1603 }
 0x2f2   :  { %4181 = vst [vmem:[#allocation12_spill] sm:$0xff] %v3705_v42  ;;  %v3713_v26 = vsub.f32 %v3487_v61, %v3707_v22  ;;  %v3715_v41 = vmul.f32 0.03125, %v1604_v62  ;;  %1781 = vadd.xlane.f32.xlu0 %v1725_v52  ;;  %v1726_v25 = vmul.f32 %v3705_v42, %v3705_v42 }
 0x2f3   :  { %v1598_v35 = vpop.xlane.xlu0 %1597 }
 0x2f4   :  { %4182 = vst [vmem:[#allocation13_spill] sm:$0xff] %v3713_v26  ;;  %v3721_v19 = vsub.f32 %v3491_v12, %v3715_v41  ;;  %v3723_v4 = vmul.f32 0.03125, %v1598_v35  ;;  %1783 = vadd.xlane.f32.xlu1 %v1726_v25  ;;  %v1715_v27 = vmul.f32 %v3713_v26, %v3713_v26 }
 0x2f5   :  { %v1600_v48 = vpop.xlane.xlu1 %1599 }
 0x2f6   :  { %4183 = vst [vmem:[#allocation14_spill] sm:$0xff] %v3721_v19  ;;  %v3729_v61 = vsub.f32 %v3495_v13, %v3723_v4  ;;  %v3731_v62 = vmul.f32 0.03125, %v1600_v48  ;;  %1761 = vadd.xlane.f32.xlu0 %v1715_v27  ;;  %v1716_v52 = vmul.f32 %v3721_v19, %v3721_v19 }
 0x2f7   :  { %v1630_v42 = vpop.xlane.xlu0 %1629 }
 0x2f8   :  { %4184 = vst [vmem:[#allocation15_spill] sm:$0xff] %v3729_v61  ;;  %v3737_v12 = vsub.f32 %v3499_v15, %v3731_v62  ;;  %v3739_v35 = vmul.f32 0.03125, %v1630_v42  ;;  %1763 = vadd.xlane.f32.xlu1 %v1716_v52  ;;  %v1713_v25 = vmul.f32 %v3729_v61, %v3729_v61 }
 0x2f9   :  { %v1632_v26 = vpop.xlane.xlu1 %1631 }
 0x2fa   :  { %4185 = vst [vmem:[#allocation16_spill] sm:$0xff] %v3737_v12  ;;  %v3745_v13 = vsub.f32 %v3503_v60, %v3739_v35  ;;  %v3747_v48 = vmul.f32 0.03125, %v1632_v26  ;;  %1757 = vadd.xlane.f32.xlu0 %v1713_v25  ;;  %v1714_v27 = vmul.f32 %v3737_v12, %v3737_v12 }
 0x2fb   :  { %v1634_v19 = vpop.xlane.xlu0 %1633 }
 0x2fc   :  { %4186 = vst [vmem:[#allocation17_spill] sm:$0xff] %v3745_v13  ;;  %v3753_v15 = vsub.f32 %v3507_v28, %v3747_v48  ;;  %v3755_v42 = vmul.f32 0.03125, %v1634_v19  ;;  %1759 = vadd.xlane.f32.xlu1 %v1714_v27  ;;  %v1729_v52 = vmul.f32 %v3745_v13, %v3745_v13 }
 0x2fd   :  { %v1636_v61 = vpop.xlane.xlu1 %1635 }
 0x2fe   :  { %4187 = vst [vmem:[#allocation18_spill] sm:$0xff] %v3753_v15  ;;  %v3761_v60 = vsub.f32 %v3511_v10, %v3755_v42  ;;  %v3763_v26 = vmul.f32 0.03125, %v1636_v61  ;;  %1789 = vadd.xlane.f32.xlu0 %v1729_v52  ;;  %v1730_v25 = vmul.f32 %v3753_v15, %v3753_v15  ;;  %v1799_v10 = vmul.f32 %v3519_v32, %v3519_v32 }
 0x2ff   :  { %v1800_v61 = vmul.f32 %v3525_v45, %v3525_v45  ;;  %v1815_v52 = vmul.f32 %v3531_v9, %v3531_v9  ;;  %v1813_v32 = vmul.f32 %v3563_v57, %v3563_v57  ;;  %v1819_v57 = vmul.f32 %v3595_v47, %v3595_v47 }
 0x300   :  { %4188 = vst [vmem:[#allocation19_spill] sm:$0xff] %v3761_v60  ;;  %4189 = vst [vmem:[#allocation20_spill] sm:$0xff] %v3763_v26  ;;  %v3769_v28 = vsub.f32 %v3515_v16, %v3763_v26  ;;  %1791 = vadd.xlane.f32.xlu1 %v1730_v25  ;;  %v1731_v19 = vmul.f32 %v3761_v60, %v3761_v60  ;;  %v1831_v16 = vmul.f32 96.0, %v1799_v10 }
 0x301   :  { %v1816_v25 = vmul.f32 %v3539_v24, %v3539_v24  ;;  %v1847_v9 = vmul.f32 96.0, %v1815_v52  ;;  %v1814_v10 = vmul.f32 %v3571_v1, %v3571_v1  ;;  %v1803_v24 = vmul.f32 %v3579_v37, %v3579_v37 }
 0x302   :  { %4190 = vst [vmem:[#allocation22_spill] sm:$0xff] %v3769_v28  ;;  %1793 = vadd.xlane.f32.xlu0 %v1731_v19  ;;  %v1732_v27 = vmul.f32 %v3769_v28, %v3769_v28  ;;  %v1797_v19 = vmul.f32 %v3547_v21, %v3547_v21  ;;  %v1832_v28 = vmul.f32 96.0, %v1800_v61  ;;  %v1804_v21 = vmul.f32 %v3587_v38, %v3587_v38 }
 0x303   :  { %v1848_v61 = vmul.f32 96.0, %v1816_v25  ;;  %v1845_v52 = vmul.f32 96.0, %v1813_v32  ;;  %v1801_v38 = vmul.f32 %v3611_v43, %v3611_v43  ;;  %v1835_v25 = vmul.f32 96.0, %v1803_v24 }
 0x304   :  { %1795 = vadd.xlane.f32.xlu1 %v1732_v27  ;;  %v1798_v27 = vmul.f32 %v3555_v5, %v3555_v5  ;;  %v1829_v26 = vmul.f32 96.0, %v1797_v19  ;;  %v1836_v19 = vmul.f32 96.0, %v1804_v21  ;;  %v1818_v21 = vmul.f32 %v3635_v31, %v3635_v31 }
 0x306   :  { %v1830_v1 = vmul.f32 96.0, %v1798_v27  ;;  %v1817_v27 = vmul.f32 %v3627_v7, %v3627_v7  ;;  %v3815_v7 = vmul.f32 96.0, %v1801_v38  ;;  %v1805_v38 = vmul.f32 %v3675_v39, %v3675_v39 }
 0x307   :  { %v1806_v39 = vmul.f32 %v3683_v8, %v3683_v8  ;;  %v1821_v8 = vmul.f32 %v3691_v40, %v3691_v40 }
 0x353   :  { %v1738_v15 = vpop.xlane.xlu0 %1737 }
 0x354   :  { %v1863_v60 = vsub.f32 %v1738_v15, %v1831_v16 }
 0x355   :  { %v1740_v45 = vpop.xlane.xlu1 %1739 }
 0x356   :  { %v1895_v13 = vmul.f32 0.03125, %v1863_v60  ;;  %v1864_v12 = vsub.f32 %v1740_v45, %v1832_v28  ;;  %v1820_v60 = vmul.f32 %v3603_v0, %v3603_v0  ;;  %v1802_v0 = vmul.f32 %v3619_v55, %v3619_v55 }
 0x357   :  { %v1770_v15 = vpop.xlane.xlu0 %1769  ;;  %v1808_v55 = vmul.f32 %v3651_v6, %v3651_v6 }
 0x358   :  { %v1927_v16 = vadd.f32 1e-05, %v1895_v13  ;;  %v1896_v5 = vmul.f32 0.03125, %v1864_v12  ;;  %v1879_v11 = vsub.f32 %v1770_v15, %v1847_v9  ;;  %v1846_v12 = vmul.f32 96.0, %v1814_v10 }
 0x359   :  { %v1772_v28 = vpop.xlane.xlu1 %1771 }
 0x35a   :  { %2419 = vrsqrt.f32 %v1927_v16  ;;  %v1928_v37 = vadd.f32 1e-05, %v1896_v5  ;;  %v1911_v45 = vmul.f32 0.03125, %v1879_v11  ;;  %v1880_v20 = vsub.f32 %v1772_v28, %v1848_v61 }
 0x35b   :  { %v1734_v13 = vpop.xlane.xlu0 %1733  ;;  %v3805_v11 = vmul.f32 96.0, %v1819_v57  ;;  %v3807_v61 = vmul.f32 96.0, %v1820_v60  ;;  %v1823_v60 = vmul.f32 %v3659_v53, %v3659_v53  ;;  %v1824_v28 = vmul.f32 %v3667_v33, %v3667_v33 }
 0x35c   :  { %2421 = vrsqrt.f32 %v1928_v37  ;;  %v1943_v9 = vadd.f32 1e-05, %v1911_v45  ;;  %v1912_v47 = vmul.f32 0.03125, %v1880_v20  ;;  %v1861_v15 = vsub.f32 %v1734_v13, %v1829_v26 }
 0x35d   :  { %v1736_v32 = vpop.xlane.xlu1 %1735  ;;  %v1807_v20 = vmul.f32 %v3643_v3, %v3643_v3  ;;  %v3823_v3 = vmul.f32 96.0, %v1817_v27  ;;  %v3831_v53 = vmul.f32 96.0, %v1808_v55 }
 0x35e   :  { %2423 = vrsqrt.f32 %v1943_v9  ;;  %v1944_v43 = vadd.f32 1e-05, %v1912_v47  ;;  %v1893_v10 = vmul.f32 0.03125, %v1861_v15  ;;  %v1862_v24 = vsub.f32 %v1736_v32, %v1830_v1  ;;  %v3836_v47 = vld [vmem:[%s4096_s4] ss:$0 sm:$0xff] }
 0x35f   :  { %v1766_v26 = vpop.xlane.xlu0 %1765  ;;  %v3821_v1 = vmul.f32 96.0, %v1802_v0  ;;  %v3829_v9 = vmul.f32 96.0, %v1807_v20 }
 0x360   :  { %2425 = vrsqrt.f32 %v1944_v43  ;;  %v1925_v16 = vadd.f32 1e-05, %v1893_v10  ;;  %v1894_v5 = vmul.f32 0.03125, %v1862_v24  ;;  %v1877_v57 = vsub.f32 %v1766_v26, %v1845_v52 }
 0x361   :  { %v1768_v31 = vpop.xlane.xlu1 %1767  ;;  %v3827_v52 = vmul.f32 96.0, %v1818_v21  ;;  %v3841_v43 = vmul.f32 96.0, %v1823_v60  ;;  %v3843_v10 = vmul.f32 96.0, %v1824_v28  ;;  %v3848_v21 = vld [vmem:[%s4097_s5] ss:$0 sm:$0xff] }
 0x362   :  { %2427 = vrsqrt.f32 %v1925_v16  ;;  %v1926_v6 = vadd.f32 1e-05, %v1894_v5  ;;  %v1909_v37 = vmul.f32 0.03125, %v1877_v57  ;;  %v1878_v45 = vsub.f32 %v1768_v31, %v1846_v12 }
 0x363   :  { %v1746_v13 = vpop.xlane.xlu0 %1745  ;;  %v3854_v5 = vmul.f32 96.0, %v1805_v38 }
 0x364   :  { %v2420_v33 = vpop.eup %2419  ;;  %2429 = vrsqrt.f32 %v1926_v6  ;;  %v1941_v15 = vadd.f32 1e-05, %v1909_v37  ;;  %v1910_v0 = vmul.f32 0.03125, %v1878_v45  ;;  %v1867_v12 = vsub.f32 %v1746_v13, %v1835_v25 }
 0x365   :  { %v1991_v27 = vmul.f32 %v2420_v33, %v3523_v30  ;;  %v1748_v32 = vpop.xlane.xlu1 %1747  ;;  %v3860_v45 = vmul.f32 96.0, %v1806_v39 }
 0x366   :  { %v2422_v24 = vpop.eup %2421  ;;  %2431 = vrsqrt.f32 %v1941_v15  ;;  %v1942_v20 = vadd.f32 1e-05, %v1910_v0  ;;  %v1899_v55 = vmul.f32 0.03125, %v1867_v12  ;;  %v1868_v25 = vsub.f32 %v1748_v32, %v1836_v19 }
 0x367   :  { %v2030_v30 = vmul.f32 %v3836_v47, %v1991_v27  ;;  %v1992_v26 = vmul.f32 %v2422_v24, %v3529_v50  ;;  %v1778_v16 = vpop.xlane.xlu0 %1777  ;;  %v1822_v15 = vmul.f32 %v3699_v36, %v3699_v36 }
 0x368   :  { %v2424_v57 = vpop.eup %2423  ;;  %2433 = vrsqrt.f32 %v1942_v20  ;;  %v1931_v60 = vadd.f32 1e-05, %v1899_v55  ;;  %v1900_v28 = vmul.f32 0.03125, %v1868_v25  ;;  %v1883_v31 = vsub.f32 %v1778_v16, %v3805_v11 }
 0x369   :  { %v2069_v6 = vadd.f32 %v3848_v21, %v2030_v30  ;;  %v2031_v19 = vmul.f32 %v3836_v47, %v1992_v26  ;;  %v2007_v37 = vmul.f32 %v2424_v57, %v3537_v17  ;;  %v1780_v40 = vpop.xlane.xlu1 %1779  ;;  %v3878_v25 = vmul.f32 96.0, %v1821_v8 }
 0x36a   :  { %v2426_v13 = vpop.eup %2425  ;;  %2435 = vrsqrt.f32 %v1931_v60  ;;  %v1932_v50 = vadd.f32 1e-05, %v1900_v28  ;;  %v1915_v38 = vmul.f32 0.03125, %v1883_v31  ;;  %v1884_v33 = vsub.f32 %v1780_v40, %v3807_v61 }
 0x36b   :  { %2101 = vst [vmem:[%s4100_s8 + $0x10] sm:$0xff] %v2069_v6  ;;  %v2070_v11 = vadd.f32 %v3848_v21, %v2031_v19  ;;  %v2046_v17 = vmul.f32 %v3836_v47, %v2007_v37  ;;  %v2008_v0 = vmul.f32 %v2426_v13, %v3545_v29  ;;  %v1742_v12 = vpop.xlane.xlu0 %1741  ;;  %v3896_v13 = vmul.f32 96.0, %v1822_v15 }
 0x36c   :  { %v2428_v39 = vpop.eup %2427  ;;  %2437 = vrsqrt.f32 %v1932_v50  ;;  %v1947_v27 = vadd.f32 1e-05, %v1915_v38  ;;  %v1916_v32 = vmul.f32 0.03125, %v1884_v33  ;;  %v1865_v61 = vsub.f32 %v1742_v12, %v3815_v7 }
 0x36d   :  { %2102 = vst [vmem:[%s4100_s8 + $0x18] sm:$0xff] %v2070_v11  ;;  %v2085_v36 = vadd.f32 %v3848_v21, %v2046_v17  ;;  %v2047_v24 = vmul.f32 %v3836_v47, %v2008_v0  ;;  %v1989_v20 = vmul.f32 %v2428_v39, %v3553_v44  ;;  %v1744_v55 = vpop.xlane.xlu1 %1743  ;;  %v1811_v7 = vmul.f32 %v3707_v22, %v3707_v22 }
 0x36e   :  { %v2430_v29 = vpop.eup %2429  ;;  %2439 = vrsqrt.f32 %v1947_v27  ;;  %v1948_v30 = vadd.f32 1e-05, %v1916_v32  ;;  %v1897_v26 = vmul.f32 0.03125, %v1865_v61  ;;  %v1866_v16 = vsub.f32 %v1744_v55, %v3821_v1 }
 0x36f   :  { %2117 = vst [vmem:[%s4100_s8 + $0x90] sm:$0xff] %v2085_v36  ;;  %v2086_v57 = vadd.f32 %v3848_v21, %v2047_v24  ;;  %v2028_v44 = vmul.f32 %v3836_v47, %v1989_v20  ;;  %v1990_v8 = vmul.f32 %v2430_v29, %v3561_v2  ;;  %v1774_v60 = vpop.xlane.xlu0 %1773  ;;  %v3914_v36 = vmul.f32 96.0, %v1811_v7 }
 0x370   :  { %v2432_v28 = vpop.eup %2431  ;;  %2441 = vrsqrt.f32 %v1948_v30  ;;  %v1929_v31 = vadd.f32 1e-05, %v1897_v26  ;;  %v1898_v6 = vmul.f32 0.03125, %v1866_v16  ;;  %v1881_v1 = vsub.f32 %v1774_v60, %v3823_v3 }
 0x371   :  { %2118 = vst [vmem:[%s4100_s8 + $0x98] sm:$0xff] %v2086_v57  ;;  %v2067_v22 = vadd.f32 %v3848_v21, %v2028_v44  ;;  %v2029_v19 = vmul.f32 %v3836_v47, %v1990_v8  ;;  %v2005_v37 = vmul.f32 %v2432_v28, %v3569_v49  ;;  %v1776_v40 = vpop.xlane.xlu1 %1775  ;;  %v1812_v3 = vmul.f32 %v3715_v41, %v3715_v41 }
 0x372   :  { %v2434_v2 = vpop.eup %2433  ;;  %2443 = vrsqrt.f32 %v1929_v31  ;;  %v1930_v50 = vadd.f32 1e-05, %v1898_v6  ;;  %v1913_v38 = vmul.f32 0.03125, %v1881_v1  ;;  %v1882_v33 = vsub.f32 %v1776_v40, %v3827_v52 }
 0x373   :  { %2099 = vst [vmem:[%s4100_s8] sm:$0xff] %v2067_v22  ;;  %v2068_v11 = vadd.f32 %v3848_v21, %v2029_v19  ;;  %v2044_v49 = vmul.f32 %v3836_v47, %v2005_v37  ;;  %v2006_v15 = vmul.f32 %v2434_v2, %v3577_v18  ;;  %v1754_v17 = vpop.xlane.xlu0 %1753  ;;  %v3932_v28 = vmul.f32 96.0, %v1812_v3 }
 0x374   :  { %v2436_v0 = vpop.eup %2435  ;;  %2445 = vrsqrt.f32 %v1930_v50  ;;  %v1945_v12 = vadd.f32 1e-05, %v1913_v38  ;;  %v1914_v39 = vmul.f32 0.03125, %v1882_v33  ;;  %v1871_v52 = vsub.f32 %v1754_v17, %v3829_v9 }
 0x375   :  { %2100 = vst [vmem:[%s4100_s8 + $0x8] sm:$0xff] %v2068_v11  ;;  %v2083_v41 = vadd.f32 %v3848_v21, %v2044_v49  ;;  %v2045_v27 = vmul.f32 %v3836_v47, %v2006_v15  ;;  %v1995_v32 = vmul.f32 %v2436_v0, %v3585_v14  ;;  %v1756_v61 = vpop.xlane.xlu1 %1755  ;;  %v1809_v9 = vmul.f32 %v3723_v4, %v3723_v4 }
 0x376   :  { %v2438_v18 = vpop.eup %2437  ;;  %2447 = vrsqrt.f32 %v1945_v12  ;;  %v1946_v24 = vadd.f32 1e-05, %v1914_v39  ;;  %v1903_v20 = vmul.f32 0.03125, %v1871_v52  ;;  %v1872_v55 = vsub.f32 %v1756_v61, %v3831_v53 }
 0x377   :  { %2115 = vst [vmem:[%s4100_s8 + $0x80] sm:$0xff] %v2083_v41  ;;  %v2084_v29 = vadd.f32 %v3848_v21, %v2045_v27  ;;  %v2034_v14 = vmul.f32 %v3836_v47, %v1995_v32  ;;  %v1996_v30 = vmul.f32 %v2438_v18, %v3593_v59  ;;  %v1786_v26 = vpop.xlane.xlu0 %1785  ;;  %v3950_v11 = vmul.f32 96.0, %v1809_v9 }
 0x378   :  { %v2440_v16 = vpop.eup %2439  ;;  %2449 = vrsqrt.f32 %v1946_v24  ;;  %v1935_v7 = vadd.f32 1e-05, %v1903_v20  ;;  %v1904_v57 = vmul.f32 0.03125, %v1872_v55  ;;  %v1887_v53 = vsub.f32 %v1786_v26, %v3841_v43 }
 0x379   :  { %2116 = vst [vmem:[%s4100_s8 + $0x88] sm:$0xff] %v2084_v29  ;;  %v2073_v4 = vadd.f32 %v3848_v21, %v2034_v14  ;;  %v2035_v44 = vmul.f32 %v3836_v47, %v1996_v30  ;;  %v2011_v8 = vmul.f32 %v2440_v16, %v3601_v56  ;;  %v1788_v60 = vpop.xlane.xlu1 %1787  ;;  %v1810_v43 = vmul.f32 %v3731_v62, %v3731_v62 }
 0x37a   :  { %v2442_v59 = vpop.eup %2441  ;;  %2451 = vrsqrt.f32 %v1935_v7  ;;  %v1936_v31 = vadd.f32 1e-05, %v1904_v57  ;;  %v1919_v6 = vmul.f32 0.03125, %v1887_v53  ;;  %v1888_v1 = vsub.f32 %v1788_v60, %v3843_v10 }
 0x37b   :  { %2105 = vst [vmem:[%s4100_s8 + $0x30] sm:$0xff] %v2073_v4  ;;  %v2074_v22 = vadd.f32 %v3848_v21, %v2035_v44  ;;  %v2050_v56 = vmul.f32 %v3836_v47, %v2011_v8  ;;  %v2012_v19 = vmul.f32 %v2442_v59, %v3609_v54  ;;  %v1750_v37 = vpop.xlane.xlu0 %1749  ;;  %v1842_v24 = vmul.f32 96.0, %v1810_v43 }
 0x37c   :  { %v2444_v40 = vpop.eup %2443  ;;  %2453 = vrsqrt.f32 %v1936_v31  ;;  %v1951_v2 = vadd.f32 1e-05, %v1919_v6  ;;  %v1920_v50 = vmul.f32 0.03125, %v1888_v1  ;;  %v1869_v10 = vsub.f32 %v1750_v37, %v3854_v5  ;;  %v4191_v37 = vld [vmem:[#allocation21_spill] sm:$0xff] }
 0x37d   :  { %2106 = vst [vmem:[%s4100_s8 + $0x38] sm:$0xff] %v2074_v22  ;;  %v2089_v62 = vadd.f32 %v3848_v21, %v2050_v56  ;;  %v2051_v38 = vmul.f32 %v3836_v47, %v2012_v19  ;;  %v1993_v33 = vmul.f32 %v2444_v40, %v3617_v46  ;;  %v1752_v3 = vpop.xlane.xlu1 %1751  ;;  %v1825_v5 = vmul.f32 %v3739_v35, %v3739_v35 }
 0x37e   :  { %v2446_v54 = vpop.eup %2445  ;;  %2455 = vrsqrt.f32 %v1951_v2  ;;  %v1952_v49 = vadd.f32 1e-05, %v1920_v50  ;;  %v1901_v15 = vmul.f32 0.03125, %v1869_v10  ;;  %v1870_v17 = vsub.f32 %v1752_v3, %v3860_v45 }
 0x37f   :  { %2121 = vst [vmem:[%s4100_s8 + $0xb0] sm:$0xff] %v2089_v62  ;;  %v2090_v0 = vadd.f32 %v3848_v21, %v2051_v38  ;;  %v2032_v46 = vmul.f32 %v3836_v47, %v1993_v33  ;;  %v1994_v12 = vmul.f32 %v2446_v54, %v3625_v34  ;;  %v1782_v39 = vpop.xlane.xlu0 %1781  ;;  %v1857_v44 = vmul.f32 96.0, %v1825_v5  ;;  %v4192_v33 = vld [vmem:[#allocation20_spill] sm:$0xff] }
 0x380   :  { %v2448_v52 = vpop.eup %2447  ;;  %2457 = vrsqrt.f32 %v1952_v49  ;;  %v1933_v41 = vadd.f32 1e-05, %v1901_v15  ;;  %v1902_v27 = vmul.f32 0.03125, %v1870_v17  ;;  %v1885_v45 = vsub.f32 %v1782_v39, %v3878_v25  ;;  %v4193_v49 = vld [vmem:[#allocation8_spill] sm:$0xff] }
 0x381   :  { %2122 = vst [vmem:[%s4100_s8 + $0xb8] sm:$0xff] %v2090_v0  ;;  %v2071_v35 = vadd.f32 %v3848_v21, %v2032_v46  ;;  %v2033_v32 = vmul.f32 %v3836_v47, %v1994_v12  ;;  %v2009_v61 = vmul.f32 %v2448_v52, %v3633_v63  ;;  %v1784_v18 = vpop.xlane.xlu1 %1783  ;;  %v1826_v25 = vmul.f32 %v3747_v48, %v3747_v48 }
 0x382   :  { %v2450_v34 = vpop.eup %2449  ;;  %2459 = vrsqrt.f32 %v1933_v41  ;;  %v1934_v20 = vadd.f32 1e-05, %v1902_v27  ;;  %v1917_v55 = vmul.f32 0.03125, %v1885_v45  ;;  %v1886_v9 = vsub.f32 %v1784_v18, %v3896_v13  ;;  %v4194_v41 = vld [vmem:[#allocation9_spill] sm:$0xff] }
 0x383   :  { %2103 = vst [vmem:[%s4100_s8 + $0x20] sm:$0xff] %v2071_v35  ;;  %v2072_v29 = vadd.f32 %v3848_v21, %v2033_v32  ;;  %v2048_v14 = vmul.f32 %v3836_v47, %v2009_v61  ;;  %v2010_v63 = vmul.f32 %v2450_v34, %v3641_v23  ;;  %v1762_v30 = vpop.xlane.xlu0 %1761  ;;  %v1858_v50 = vmul.f32 96.0, %v1826_v25 }
 0x384   :  { %v2452_v26 = vpop.eup %2451  ;;  %2461 = vrsqrt.f32 %v1934_v20  ;;  %v1949_v16 = vadd.f32 1e-05, %v1917_v55  ;;  %v1918_v7 = vmul.f32 0.03125, %v1886_v9  ;;  %v1875_v13 = vsub.f32 %v1762_v30, %v3914_v36  ;;  %v4195_v55 = vld [vmem:[#allocation10_spill] sm:$0xff] }
 0x385   :  { %2104 = vst [vmem:[%s4100_s8 + $0x28] sm:$0xff] %v2072_v29  ;;  %v2087_v48 = vadd.f32 %v3848_v21, %v2048_v14  ;;  %v2049_v57 = vmul.f32 %v3836_v47, %v2010_v63  ;;  %v1999_v53 = vmul.f32 %v2452_v26, %v3649_v58  ;;  %v1764_v4 = vpop.xlane.xlu1 %1763  ;;  %v1827_v36 = vmul.f32 %v3755_v42, %v3755_v42 }
 0x386   :  { %v2454_v23 = vpop.eup %2453  ;;  %2463 = vrsqrt.f32 %v1949_v16  ;;  %v1950_v8 = vadd.f32 1e-05, %v1918_v7  ;;  %v1907_v60 = vmul.f32 0.03125, %v1875_v13  ;;  %v1876_v59 = vsub.f32 %v1764_v4, %v3932_v28  ;;  %v4196_v13 = vld [vmem:[#allocation11_spill] sm:$0xff] }
 0x387   :  { %2119 = vst [vmem:[%s4100_s8 + $0xa0] sm:$0xff] %v2087_v48  ;;  %v2088_v31 = vadd.f32 %v3848_v21, %v2049_v57  ;;  %v2038_v6 = vmul.f32 %v3836_v47, %v1999_v53  ;;  %v2000_v58 = vmul.f32 %v2454_v23, %v3657_v51  ;;  %v1758_v1 = vpop.xlane.xlu0 %1757  ;;  %v1828_v3 = vmul.f32 %v4192_v33, %v4192_v33 }
 0x388   :  { %v2456_v43 = vpop.eup %2455  ;;  %2465 = vrsqrt.f32 %v1950_v8  ;;  %v1939_v22 = vadd.f32 1e-05, %v1907_v60  ;;  %v1908_v56 = vmul.f32 0.03125, %v1876_v59  ;;  %v1873_v28 = vsub.f32 %v1758_v1, %v3950_v11  ;;  %v4197_v59 = vld [vmem:[#allocation12_spill] sm:$0xff] }
 0x389   :  { %2120 = vst [vmem:[%s4100_s8 + $0xa8] sm:$0xff] %v2088_v31  ;;  %v2077_v42 = vadd.f32 %v3848_v21, %v2038_v6  ;;  %v2039_v19 = vmul.f32 %v3836_v47, %v2000_v58  ;;  %v2015_v40 = vmul.f32 %v2456_v43, %v4191_v37  ;;  %v1760_v2 = vpop.xlane.xlu1 %1759  ;;  %v1859_v35 = vmul.f32 96.0, %v1827_v36 }
 0x38a   :  { %v2458_v51 = vpop.eup %2457  ;;  %2467 = vrsqrt.f32 %v1939_v22  ;;  %v1940_v10 = vadd.f32 1e-05, %v1908_v56  ;;  %v1905_v62 = vmul.f32 0.03125, %v1873_v28  ;;  %v1874_v38 = vsub.f32 %v1760_v2, %v1842_v24  ;;  %v4198_v22 = vld [vmem:[#allocation13_spill] sm:$0xff] }
 0x38b   :  { %2109 = vst [vmem:[%s4100_s8 + $0x50] sm:$0xff] %v2077_v42  ;;  %v2078_v11 = vadd.f32 %v3848_v21, %v2039_v19  ;;  %v2054_v54 = vmul.f32 %v3836_v47, %v2015_v40  ;;  %v2016_v15 = vmul.f32 %v2458_v51, %v4193_v49  ;;  %v1790_v17 = vpop.xlane.xlu0 %1789  ;;  %v1860_v29 = vmul.f32 96.0, %v1828_v3  ;;  %v4199_v40 = vld [vmem:[#allocation14_spill] sm:$0xff] }
 0x38c   :  { %v2460_v5 = vpop.eup %2459  ;;  %2469 = vrsqrt.f32 %v1940_v10  ;;  %v1937_v0 = vadd.f32 1e-05, %v1905_v62  ;;  %v1906_v46 = vmul.f32 0.03125, %v1874_v38  ;;  %v1889_v12 = vsub.f32 %v1790_v17, %v1857_v44  ;;  %v4200_v62 = vld [vmem:[#allocation15_spill] sm:$0xff] }
 0x38d   :  { %2110 = vst [vmem:[%s4100_s8 + $0x58] sm:$0xff] %v2078_v11  ;;  %v2093_v39 = vadd.f32 %v3848_v21, %v2054_v54  ;;  %v2055_v52 = vmul.f32 %v3836_v47, %v2016_v15  ;;  %v1997_v27 = vmul.f32 %v2460_v5, %v4194_v41  ;;  %v1792_v45 = vpop.xlane.xlu1 %1791  ;;  %v4201_v54 = vld [vmem:[#allocation16_spill] sm:$0xff]  ;;  %v4203_v41 = vld [vmem:[#allocation18_spill] sm:$0xff] }
 0x38e   :  { %v2462_v32 = vpop.eup %2461  ;;  %2471 = vrsqrt.f32 %v1937_v0  ;;  %v1938_v61 = vadd.f32 1e-05, %v1906_v46  ;;  %v1921_v18 = vmul.f32 0.03125, %v1889_v12  ;;  %v1890_v24 = vsub.f32 %v1792_v45, %v1858_v50  ;;  %v4202_v0 = vld [vmem:[#allocation17_spill] sm:$0xff] }
 0x38f   :  { %2125 = vst [vmem:[%s4100_s8 + $0xd0] sm:$0xff] %v2093_v39  ;;  %v2094_v34 = vadd.f32 %v3848_v21, %v2055_v52  ;;  %v2036_v20 = vmul.f32 %v3836_v47, %v1997_v27  ;;  %v1998_v9 = vmul.f32 %v2462_v32, %v4195_v55  ;;  %v1794_v25 = vpop.xlane.xlu0 %1793  ;;  %v4205_v55 = vld [vmem:[#allocation22_spill] sm:$0xff] }
 0x390   :  { %v2464_v14 = vpop.eup %2463  ;;  %2473 = vrsqrt.f32 %v1938_v61  ;;  %v1953_v63 = vadd.f32 1e-05, %v1921_v18  ;;  %v1922_v30 = vmul.f32 0.03125, %v1890_v24  ;;  %v1891_v26 = vsub.f32 %v1794_v25, %v1859_v35  ;;  %v4204_v61 = vld [vmem:[#allocation19_spill] sm:$0xff] }
 0x391   :  { %2126 = vst [vmem:[%s4100_s8 + $0xd8] sm:$0xff] %v2094_v34  ;;  %v2075_v16 = vadd.f32 %v3848_v21, %v2036_v20  ;;  %v2037_v7 = vmul.f32 %v3836_v47, %v1998_v9  ;;  %v2013_v48 = vmul.f32 %v2464_v14, %v4196_v13  ;;  %v1796_v57 = vpop.xlane.xlu1 %1795 }
 0x392   :  { %v2466_v53 = vpop.eup %2465  ;;  %2475 = vrsqrt.f32 %v1953_v63  ;;  %v1954_v4 = vadd.f32 1e-05, %v1922_v30  ;;  %v1923_v44 = vmul.f32 0.03125, %v1891_v26  ;;  %v1892_v23 = vsub.f32 %v1796_v57, %v1860_v29 }
 0x393   :  { %2107 = vst [vmem:[%s4100_s8 + $0x40] sm:$0xff] %v2075_v16  ;;  %v2076_v8 = vadd.f32 %v3848_v21, %v2037_v7  ;;  %v2052_v60 = vmul.f32 %v3836_v47, %v2013_v48  ;;  %v2014_v36 = vmul.f32 %v2466_v53, %v4197_v59 }
 0x394   :  { %v2468_v31 = vpop.eup %2467  ;;  %2477 = vrsqrt.f32 %v1954_v4  ;;  %v1955_v6 = vadd.f32 1e-05, %v1923_v44  ;;  %v1924_v58 = vmul.f32 0.03125, %v1892_v23 }
 0x395   :  { %2108 = vst [vmem:[%s4100_s8 + $0x48] sm:$0xff] %v2076_v8  ;;  %v2091_v1 = vadd.f32 %v3848_v21, %v2052_v60  ;;  %v2053_v43 = vmul.f32 %v3836_v47, %v2014_v36  ;;  %v2003_v56 = vmul.f32 %v2468_v31, %v4198_v22 }
 0x396   :  { %v2470_v28 = vpop.eup %2469  ;;  %2479 = vrsqrt.f32 %v1955_v6  ;;  %v1956_v42 = vadd.f32 1e-05, %v1924_v58 }
 0x397   :  { %2123 = vst [vmem:[%s4100_s8 + $0xc0] sm:$0xff] %v2091_v1  ;;  %v2092_v19 = vadd.f32 %v3848_v21, %v2053_v43  ;;  %v2042_v37 = vmul.f32 %v3836_v47, %v2003_v56  ;;  %v2004_v2 = vmul.f32 %v2470_v28, %v4199_v40 }
 0x398   :  { %v2472_v50 = vpop.eup %2471  ;;  %2481 = vrsqrt.f32 %v1956_v42 }
 0x399   :  { %2124 = vst [vmem:[%s4100_s8 + $0xc8] sm:$0xff] %v2092_v19  ;;  %v2081_v51 = vadd.f32 %v3848_v21, %v2042_v37  ;;  %v2043_v10 = vmul.f32 %v3836_v47, %v2004_v2  ;;  %v2001_v38 = vmul.f32 %v2472_v50, %v4200_v62 }
 0x39a   :  { %v2474_v33 = vpop.eup %2473 }
 0x39b   :  { %2113 = vst [vmem:[%s4100_s8 + $0x70] sm:$0xff] %v2081_v51  ;;  %v2082_v3 = vadd.f32 %v3848_v21, %v2043_v10  ;;  %v2040_v11 = vmul.f32 %v3836_v47, %v2001_v38  ;;  %v2002_v49 = vmul.f32 %v2474_v33, %v4201_v54 }
 0x39c   :  { %v2476_v15 = vpop.eup %2475 }
 0x39d   :  { %2114 = vst [vmem:[%s4100_s8 + $0x78] sm:$0xff] %v2082_v3  ;;  %v2079_v17 = vadd.f32 %v3848_v21, %v2040_v11  ;;  %v2041_v5 = vmul.f32 %v3836_v47, %v2002_v49  ;;  %v2017_v46 = vmul.f32 %v2476_v15, %v4202_v0 }
 0x39e   :  { %v2478_v12 = vpop.eup %2477 }
 0x39f   :  { %2111 = vst [vmem:[%s4100_s8 + $0x60] sm:$0xff] %v2079_v17  ;;  %v2080_v39 = vadd.f32 %v3848_v21, %v2041_v5  ;;  %v2056_v52 = vmul.f32 %v3836_v47, %v2017_v46  ;;  %v2018_v27 = vmul.f32 %v2478_v12, %v4203_v41 }
 0x3a0   :  { %v2480_v45 = vpop.eup %2479 }
 0x3a1   :  { %2112 = vst [vmem:[%s4100_s8 + $0x68] sm:$0xff] %v2080_v39  ;;  %v2095_v35 = vadd.f32 %v3848_v21, %v2056_v52  ;;  %v2057_v32 = vmul.f32 %v3836_v47, %v2018_v27  ;;  %v2019_v18 = vmul.f32 %v2480_v45, %v4204_v61 }
 0x3a2   :  { %v2482_v24 = vpop.eup %2481 }
 0x3a3   :  { %2127 = vst [vmem:[%s4100_s8 + $0xe0] sm:$0xff] %v2095_v35  ;;  %v2096_v34 = vadd.f32 %v3848_v21, %v2057_v32  ;;  %v2058_v20 = vmul.f32 %v3836_v47, %v2019_v18  ;;  %v2020_v9 = vmul.f32 %v2482_v24, %v4205_v55 }
 0x3a5   :  { %2128 = vst [vmem:[%s4100_s8 + $0xe8] sm:$0xff] %v2096_v34  ;;  %v2097_v25 = vadd.f32 %v3848_v21, %v2058_v20  ;;  %v2059_v29 = vmul.f32 %v3836_v47, %v2020_v9 }
 0x3a7   :  { %2129 = vst [vmem:[%s4100_s8 + $0xf0] sm:$0xff] %v2097_v25  ;;  %v2098_v14 = vadd.f32 %v3848_v21, %v2059_v29 }
 0x3a9   :  { %2130 = vst [vmem:[%s4100_s8 + $0xf8] sm:$0xff] %v2098_v14 }

</bundles_post_ra>
